<compile_context>
chip_gen: v7x
topology: tpu7x:2x2x1
jax: 0.10.0
libtpu: 0.0.40
codegen_flags: <defaults>
</compile_context>

<pallas_src>
import numpy as np
import jax
import jax.numpy as jnp
from jax.experimental import pallas as pl
from jax.experimental.pallas import tpu as pltpu


MASK_VALUE = -1e30  # stays in f32 score space (not representable in bf16)


# ---------------------------------------------------------------------------
# Pallas kernel
# ---------------------------------------------------------------------------
def make_flash_cross_attn_kernel(head_dim, kv_tile):
    half = head_dim // 2
    scale = head_dim ** (-0.5)

    def rot_half(x):  # lane rotation by d/2: [x2, x1] (sign folded into sin tables)
        return jnp.concatenate([x[:, half:], x[:, :half]], axis=-1)

    def kernel(kvlen_ref,                        # scalar prefetch: (B,) int32 (SMEM)
               q_ref, k_ref, v_ref,              # bf16: (1,1,Lq,d), (1,1,tk,d), (1,1,tk,d)
               cosq_ref, sinq_ref,               # f32 : (1,Lq,d)   (sin has rotate_half sign folded in)
               cosk_ref, sink_ref, dist_ref,     # f32 : (1,tk,d)
               o_ref,                            # f32 : (1,1,Lq,d)
               qrot_scr, m_scr, l_scr, acc_scr):
        b = pl.program_id(0)
        kv = pl.program_id(2)
        n_kv = pl.num_programs(2)
        kv_len = kvlen_ref[b]                    # valid keys for this batch row

        # ---- per-(batch, head) init: reset online softmax, cache RoPE'd/scaled q ----
        @pl.when(kv == 0)
        def _init():
            m_scr[...] = jnp.full(m_scr.shape, -jnp.inf, m_scr.dtype)
            l_scr[...] = jnp.zeros(l_scr.shape, l_scr.dtype)
            acc_scr[...] = jnp.zeros(acc_scr.shape, acc_scr.dtype)
            q = q_ref[0, 0].astype(jnp.float32) * scale                       # (Lq, d)
            q_rot = q * cosq_ref[0] + rot_half(q) * sinq_ref[0]
            qrot_scr[...] = q_rot.astype(qrot_scr.dtype)                      # bf16 cache

        # ---- online softmax update; skip KV tiles entirely past the valid prefix ----
        @pl.when(kv * kv_tile < kv_len)
        def _update():
            k = k_ref[0, 0].astype(jnp.float32)                               # (tk, d)
            k_rot = (k * cosk_ref[0]
                     + rot_half(k) * sink_ref[0]
                     + dist_ref[0])

            # scores: contract the shared last dim (no key transpose), bf16 -> f32 acc
            s = jax.lax.dot_general(
                qrot_scr[...], k_rot.astype(jnp.bfloat16),
                dimension_numbers=(((1,), (1,)), ((), ())),
                preferred_element_type=jnp.float32)                           # (Lq, tk)

            key_idx = kv * kv_tile + jax.lax.broadcasted_iota(
                jnp.int32, (1, kv_tile), 1)                                   # (1, tk)
            s = jnp.where(key_idx < kv_len, s, MASK_VALUE)

            m_prev = m_scr[...]                                               # (Lq, 1)
            m_new = jnp.maximum(m_prev, jnp.max(s, axis=-1, keepdims=True))
            alpha = jnp.exp(m_prev - m_new)                                   # (Lq, 1)
            p = jnp.exp(s - m_new)                                            # (Lq, tk)
            l_scr[...] = alpha * l_scr[...] + jnp.sum(p, axis=-1, keepdims=True)
            pv = jnp.dot(p.astype(jnp.bfloat16), v_ref[0, 0],
                         preferred_element_type=jnp.float32)                  # (Lq, d)
            acc_scr[...] = alpha * acc_scr[...] + pv
            m_scr[...] = m_new

        # ---- finalize after the last KV tile ----
        @pl.when(kv == n_kv - 1)
        def _finalize():
            l = l_scr[...]
            # guard kv_len == 0 (all tiles skipped): emit zeros instead of NaN/garbage
            inv_l = jnp.where(l > 0.0, 1.0 / jnp.where(l > 0.0, l, 1.0), 0.0)
            o_ref[0, 0] = (acc_scr[...] * inv_l).astype(o_ref.dtype)

    return kernel


def multi_seq_cross_attention_pallas(kv_lens, q_heads, k_heads, v_heads,
                                     cos_q, sin_q_signed, cos_k, sin_k_signed,
                                     dist_emb, *, kv_tile=512):
    """Flash-style multi-sequence cross attention.

    kv_lens                         (B,)          int32
    q_heads                         (B, h, Lq, d) bf16
    k_heads, v_heads                (B, h, Lk, d) bf16
    cos_q, sin_q_signed             (B, Lq, d)    f32
    cos_k, sin_k_signed, dist_emb   (B, Lk, d)    f32
    Returns the per-head attention output (B, h, Lq, d) f32 (before out_proj).
    """
    B, h, Lq, d = q_heads.shape
    Lk = k_heads.shape[2]
    tk = Lk if Lk <= kv_tile else kv_tile
    assert Lk % tk == 0, "caller must pad Lk to a multiple of the KV tile"
    n_kv = Lk // tk

    kernel = make_flash_cross_attn_kernel(d, tk)

    def _clamp_kv(kv, kvlen_ref, b):
        # Clamp fully-padded KV tiles to the last valid block so their (repeated)
        # block index elides the DMA; the kernel already skips the compute.
        last = jnp.maximum(pl.cdiv(kvlen_ref[b], tk) - 1, 0)
        return jnp.minimum(kv, last)

    q_map = lambda b, hh, kv, kvlen: (b, hh, 0, 0)
    kv_map = lambda b, hh, kv, kvlen: (b, hh, _clamp_kv(kv, kvlen, b), 0)
    qpos_map = lambda b, hh, kv, kvlen: (b, 0, 0)
    kpos_map = lambda b, hh, kv, kvlen: (b, _clamp_kv(kv, kvlen, b), 0)

    grid_spec = pltpu.PrefetchScalarGridSpec(
        num_scalar_prefetch=1,
        grid=(B, h, n_kv),
        in_specs=[
            pl.BlockSpec((1, 1, Lq, d), q_map),
            pl.BlockSpec((1, 1, tk, d), kv_map),
            pl.BlockSpec((1, 1, tk, d), kv_map),
            pl.BlockSpec((1, Lq, d), qpos_map),
            pl.BlockSpec((1, Lq, d), qpos_map),
            pl.BlockSpec((1, tk, d), kpos_map),
            pl.BlockSpec((1, tk, d), kpos_map),
            pl.BlockSpec((1, tk, d), kpos_map),
        ],
        out_specs=pl.BlockSpec((1, 1, Lq, d), q_map),
        scratch_shapes=[
            pltpu.VMEM((Lq, d), jnp.bfloat16),   # cached scaled + RoPE'd q
            pltpu.VMEM((Lq, 1), jnp.float32),    # running max m
            pltpu.VMEM((Lq, 1), jnp.float32),    # running denom l
            pltpu.VMEM((Lq, d), jnp.float32),    # running numerator acc
        ],
    )

    # Explicit VMEM budget: 2x (double buffer) per block + scratch + slack.
    q_blk, k_blk = Lq * d, tk * d
    block_bytes = (2 * q_blk            # q bf16
                   + 2 * 2 * k_blk      # k, v bf16
                   + 2 * 4 * q_blk      # cos_q, sin_q f32
                   + 3 * 4 * k_blk      # cos_k, sin_k, dist f32
                   + 4 * q_blk)         # output f32
    scratch_bytes = 2 * q_blk + 4 * q_blk + 4 * q_blk + 2 * 4 * Lq
    vmem_limit = int(min(max(2 * block_bytes + scratch_bytes + (2 << 20), 16 << 20),
                         64 << 20))     # stay under v7x's 64 MiB per-core VMEM

    return pl.pallas_call(
        kernel,
        grid_spec=grid_spec,
        out_shape=jax.ShapeDtypeStruct((B, h, Lq, d), jnp.float32),
        compiler_params=pltpu.CompilerParams(
            dimension_semantics=("parallel", "parallel", "arbitrary"),
            vmem_limit_bytes=vmem_limit,
        ),
    )(kv_lens, q_heads, k_heads, v_heads, cos_q, sin_q_signed,
      cos_k, sin_k_signed, dist_emb)


# ---------------------------------------------------------------------------
# Host-side glue: data-dependent position bookkeeping (numpy, mirrors the
# Python loops in the reference module)
# ---------------------------------------------------------------------------
def _segment_positions(mask_in_length):
    """Positions restart at 0 for each packed sub-sequence."""
    mask_in_length = np.asarray(mask_in_length)
    B, L = mask_in_length.shape
    pos = np.zeros((B, L), dtype=np.float32)
    for i in range(B):
        lengths = mask_in_length[i][mask_in_length[i] != 0]
        if lengths.size:
            p = np.concatenate([np.arange(int(l)) for l in lengths]).astype(np.float32)
            pos[i, : p.shape[0]] = p
    return pos


def _expand_distances(distances_in_length, mask_in_length):
    distances_in_length = np.asarray(distances_in_length, dtype=np.float32)
    mask_in_length = np.asarray(mask_in_length)
    B, L = distances_in_length.shape
    pos = np.zeros((B, L), dtype=np.float32)
    for i in range(B):
        nz = np.nonzero(mask_in_length[i])[0]
        lengths = mask_in_length[i][nz].astype(np.int64)
        dists = distances_in_length[i][nz].astype(np.float32)
        d2 = np.repeat(dists, lengths)
        pos[i, : d2.shape[0]] = d2
    return pos


def _rope_cos_sin(positions, dim, base):
    inv_freq = 1.0 / (base ** (np.arange(0, dim, 2, dtype=np.float32) / dim))
    freqs = positions[:, :, None] * inv_freq[None, None, :]
    emb = np.concatenate([freqs, freqs], axis=-1)
    return np.cos(emb).astype(np.float32), np.sin(emb).astype(np.float32)


def _distance_embedding(dist_pos, dim, start, stop):
    freqs = np.geomspace(start=start, stop=stop, num=dim // 2).astype(np.float32)
    args = dist_pos[:, :, None] * freqs[None, None, :]
    return np.concatenate([np.cos(args), np.sin(args)], axis=-1).astype(np.float32)


class MultiSequenceCrossAttentionPallas:
    """JAX/Pallas port of ppievo MultiSequenceCrossAttention (forward only)."""

    def __init__(self, hidden_size, num_attention_heads, key,
                 rope_base=10000, dist_start=1e-5, dist_stop=0.25, kv_tile=512):
        self.hidden_size = hidden_size
        self.num_heads = num_attention_heads
        self.head_dim = hidden_size // num_attention_heads
        assert self.head_dim * num_attention_heads == hidden_size
        assert self.head_dim % 2 == 0
        self.rope_base = rope_base
        self.dist_start = dist_start
        self.dist_stop = dist_stop
        # KV tile (flash blocking). Tune per chip: ~128 on v5e, 256/512 on v6e/v7x.
        self.kv_tile = kv_tile
        H = hidden_size
        ks = jax.random.split(key, 6)
        s = 0.02
        self.Wq = jax.random.normal(ks[0], (H, H), jnp.float32) * s
        self.bq = jax.random.normal(ks[1], (H,), jnp.float32) * s
        self.Wkv = jax.random.normal(ks[2], (2 * H, H), jnp.float32) * s
        self.bkv = jax.random.normal(ks[3], (2 * H,), jnp.float32) * s
        self.Wout = jax.random.normal(ks[4], (H, H), jnp.float32) * s
        self.bout = jax.random.normal(ks[5], (H,), jnp.float32) * s

    def _encodings(self, mask_q, mask_kv, distances):
        d = self.head_dim
        pos_q = _segment_positions(mask_q)
        pos_k = _segment_positions(mask_kv)
        cos_q, sin_q = _rope_cos_sin(pos_q, d, self.rope_base)
        cos_k, sin_k = _rope_cos_sin(pos_k, d, self.rope_base)
        dist_pos = _expand_distances(distances, mask_kv)
        dist_emb = _distance_embedding(dist_pos, d, self.dist_start, self.dist_stop)
        # fold rotate_half's (-x2, +x1) sign into the sin tables so the kernel can
        # use a plain half-dim lane rotation * sin directly
        sin_q_signed = sin_q.copy(); sin_q_signed[..., : d // 2] *= -1.0
        sin_k_signed = sin_k.copy(); sin_k_signed[..., : d // 2] *= -1.0
        return cos_q, sin_q_signed, cos_k, sin_k_signed, dist_emb

    def __call__(self, q_states, kv_states, mask_q, mask_kv, distances):
        B, Lq, H = q_states.shape
        Lk = kv_states.shape[1]
        h, d = self.num_heads, self.head_dim

        # q/kv projections (plain XLA matmuls, as in the reference module)
        q = q_states @ self.Wq.T + self.bq                        # (B, Lq, H)
        kv = kv_states @ self.Wkv.T + self.bkv                    # (B, Lk, 2H)
        kv = kv.reshape(B, Lk, 2, h, d)
        q_heads = jnp.transpose(q.reshape(B, Lq, h, d), (0, 2, 1, 3)).astype(jnp.bfloat16)
        k_heads = jnp.transpose(kv[:, :, 0], (0, 2, 1, 3)).astype(jnp.bfloat16)
        v_heads = jnp.transpose(kv[:, :, 1], (0, 2, 1, 3)).astype(jnp.bfloat16)

        cos_q, sin_q_s, cos_k, sin_k_s, dist_emb = self._encodings(
            mask_q, mask_kv, distances)

        q_lens = np.asarray(mask_q).sum(-1).astype(np.int32)       # (B,)
        kv_lens = np.asarray(mask_kv).sum(-1).astype(np.int32)     # (B,)

        # pad Lk to a multiple of the KV tile (padded keys lie beyond kv_len -> masked)
        tk = Lk if Lk <= self.kv_tile else self.kv_tile
        pad = (-Lk) % tk
        if pad:
            k_heads = jnp.pad(k_heads, ((0, 0), (0, 0), (0, pad), (0, 0)))
            v_heads = jnp.pad(v_heads, ((0, 0), (0, 0), (0, pad), (0, 0)))
            cos_k = np.pad(cos_k, ((0, 0), (0, pad), (0, 0)))
            sin_k_s = np.pad(sin_k_s, ((0, 0), (0, pad), (0, 0)))
            dist_emb = np.pad(dist_emb, ((0, 0), (0, pad), (0, 0)))

        attn = multi_seq_cross_attention_pallas(
            jnp.asarray(kv_lens), q_heads, k_heads, v_heads,
            jnp.asarray(cos_q), jnp.asarray(sin_q_s),
            jnp.asarray(cos_k), jnp.asarray(sin_k_s), jnp.asarray(dist_emb),
            kv_tile=self.kv_tile)                                  # (B, h, Lq, d) f32

        # pad_input semantics: zero padded query rows once (outside any per-head /
        # per-tile loop), then a single hidden-wide out_proj matmul + bias.
        q_valid = jnp.arange(Lq)[None, :] < jnp.asarray(q_lens)[:, None]   # (B, Lq)
        attn = jnp.where(q_valid[:, None, :, None], attn, 0.0)
        attn = jnp.transpose(attn, (0, 2, 1, 3)).reshape(B, Lq, H)
        return attn @ self.Wout.T + self.bout


# ---------------------------------------------------------------------------
# Pure-numpy f32 reference (same math) for a sanity check
# ---------------------------------------------------------------------------
def reference_forward(module, q_states, kv_states, mask_q, mask_kv, distances):
    Wq, bq = np.asarray(module.Wq), np.asarray(module.bq)
    Wkv, bkv = np.asarray(module.Wkv), np.asarray(module.bkv)
    Wout, bout = np.asarray(module.Wout), np.asarray(module.bout)
    h, d = module.num_heads, module.head_dim

    B, Lq, H = q_states.shape
    Lk = kv_states.shape[1]

    q = q_states @ Wq.T + bq
    kv = (kv_states @ Wkv.T + bkv).reshape(B, Lk, 2, h, d)
    qh = q.reshape(B, Lq, h, d).transpose(0, 2, 1, 3)
    kh = kv[:, :, 0].transpose(0, 2, 1, 3)
    vh = kv[:, :, 1].transpose(0, 2, 1, 3)

    pos_q = _segment_positions(mask_q)
    pos_k = _segment_positions(mask_kv)
    cos_q, sin_q = _rope_cos_sin(pos_q, d, module.rope_base)
    cos_k, sin_k = _rope_cos_sin(pos_k, d, module.rope_base)
    dist_pos = _expand_distances(distances, mask_kv)
    dist = _distance_embedding(dist_pos, d, module.dist_start, module.dist_stop)

    def rot_half(x):
        return np.concatenate([-x[..., d // 2:], x[..., : d // 2]], axis=-1)

    scale = d ** (-0.5)
    qs = qh * scale
    q_rot = qs * cos_q[:, None] + rot_half(qs) * sin_q[:, None]
    k_rot = kh * cos_k[:, None] + rot_half(kh) * sin_k[:, None] + dist[:, None]

    q_lens = np.asarray(mask_q).sum(-1)
    kv_lens = np.asarray(mask_kv).sum(-1)

    out_heads = np.zeros((B, h, Lq, d), np.float32)
    for b in range(B):
        for hh in range(h):
            s = q_rot[b, hh] @ k_rot[b, hh].T
            s[:, kv_lens[b]:] = -1e30
            s = s - s.max(-1, keepdims=True)
            p = np.exp(s)
            p = p / p.sum(-1, keepdims=True)
            a = p @ vh[b, hh]
            a[q_lens[b]:] = 0.0
            out_heads[b, hh] = a
    out = out_heads.transpose(0, 2, 1, 3).reshape(B, Lq, h * d)
    return out @ Wout.T + bout


# ---------------------------------------------------------------------------
if __name__ == "__main__":
    B, Lq, Lk = 2, 8, 8
    hidden, n_heads = 256, 2          # head_dim = 128 (native lane width)

    key = jax.random.PRNGKey(0)
    kp, k1, k2 = jax.random.split(key, 3)

    q_states = jax.random.normal(k1, (B, Lq, hidden), jnp.float32)
    kv_states = jax.random.normal(k2, (B, Lk, hidden), jnp.float32)

    # packed multi-sequence lengths (zero-padded) and per-sequence distances
    mask_q = np.zeros((B, Lq), np.int32)
    mask_q[0, :2] = [3, 4]
    mask_q[1, :2] = [5, 2]
    mask_kv = np.zeros((B, Lk), np.int32)
    mask_kv[0, :2] = [4, 3]
    mask_kv[1, :2] = [2, 5]
    distances = np.zeros((B, Lk), np.float32)
    distances[0, :2] = [0.1, 0.5]
    distances[1, :2] = [0.3, 0.7]

    module = MultiSequenceCrossAttentionPallas(hidden, n_heads, kp)

    out = module(q_states, kv_states, mask_q, mask_kv, distances)
    out = jax.block_until_ready(out)

    ref = reference_forward(module, np.asarray(q_states), np.asarray(kv_states),
                            mask_q, mask_kv, distances)
    np.testing.assert_allclose(np.asarray(out), ref, rtol=2e-2, atol=2e-2)

    print("KERNEL_OK")
</pallas_src>

<mosaic_0001>
module attributes {stable_mosaic.version = 11 : i64} {
  func.func @kernel(%arg0: i32, %arg1: i32, %arg2: i32, %arg3: memref<2xi32, #tpu.memory_space<smem>>, %arg4: memref<1x1x8x128xbf16, #tpu.memory_space<vmem>>, %arg5: memref<1x1x8x128xbf16, #tpu.memory_space<vmem>>, %arg6: memref<1x1x8x128xbf16, #tpu.memory_space<vmem>>, %arg7: memref<1x8x128xf32, #tpu.memory_space<vmem>>, %arg8: memref<1x8x128xf32, #tpu.memory_space<vmem>>, %arg9: memref<1x8x128xf32, #tpu.memory_space<vmem>>, %arg10: memref<1x8x128xf32, #tpu.memory_space<vmem>>, %arg11: memref<1x8x128xf32, #tpu.memory_space<vmem>>, %arg12: memref<1x1x8x128xf32, #tpu.memory_space<vmem>>, %arg13: memref<8x128xbf16, #tpu.memory_space<vmem>>, %arg14: memref<8x1xf32, #tpu.memory_space<vmem>>, %arg15: memref<8x1xf32, #tpu.memory_space<vmem>>, %arg16: memref<8x128xf32, #tpu.memory_space<vmem>>) attributes {dimension_semantics = [#tpu.dimension_semantics<parallel>, #tpu.dimension_semantics<parallel>, #tpu.dimension_semantics<arbitrary>], iteration_bounds = array<i64: 2, 2, 1>, scalar_prefetch = 1 : i64, scratch_operands = 4 : i64, tpu.core_type = #tpu.core_type<tc>, window_params = [{transform_indices = @transform_0, window_bounds = array<i64: 1, 1, 8, 128>}, {transform_indices = @transform_1, window_bounds = array<i64: 1, 1, 8, 128>}, {transform_indices = @transform_2, window_bounds = array<i64: 1, 1, 8, 128>}, {transform_indices = @transform_3, window_bounds = array<i64: 1, 8, 128>}, {transform_indices = @transform_4, window_bounds = array<i64: 1, 8, 128>}, {transform_indices = @transform_5, window_bounds = array<i64: 1, 8, 128>}, {transform_indices = @transform_6, window_bounds = array<i64: 1, 8, 128>}, {transform_indices = @transform_7, window_bounds = array<i64: 1, 8, 128>}, {transform_indices = @transform_8, window_bounds = array<i64: 1, 1, 8, 128>}]} {
    %0 = arith.index_cast %arg0 : i32 to index
    %1 = memref.load %arg3[%0] : memref<2xi32, #tpu.memory_space<smem>>
    %c0_i32 = arith.constant 0 : i32
    %2 = arith.cmpi eq, %arg2, %c0_i32 : i32
    %3 = arith.extui %2 : i1 to i32
    %c0_i32_0 = arith.constant 0 : i32
    %4 = arith.cmpi ne, %3, %c0_i32_0 : i32
    scf.if %4 {
      %cst = arith.constant 0xFF800000 : f32
      %12 = vector.broadcast %cst : f32 to vector<8x1xf32>
      %c0 = arith.constant 0 : index
      %c0_4 = arith.constant 0 : index
      %13 = vector.load %arg14[%c0, %c0_4] : memref<8x1xf32, #tpu.memory_space<vmem>>, vector<8x1xf32>
      tpu.vector_store %arg14[%c0, %c0_4], %12 {strides = array<i32>} : memref<8x1xf32, #tpu.memory_space<vmem>>, vector<8x1xf32>,
      %cst_5 = arith.constant 0.000000e+00 : f32
      %14 = vector.broadcast %cst_5 : f32 to vector<8x1xf32>
      %c0_6 = arith.constant 0 : index
      %c0_7 = arith.constant 0 : index
      %15 = vector.load %arg15[%c0_6, %c0_7] : memref<8x1xf32, #tpu.memory_space<vmem>>, vector<8x1xf32>
      tpu.vector_store %arg15[%c0_6, %c0_7], %14 {strides = array<i32>} : memref<8x1xf32, #tpu.memory_space<vmem>>, vector<8x1xf32>,
      %cst_8 = arith.constant 0.000000e+00 : f32
      %16 = vector.broadcast %cst_8 : f32 to vector<8x128xf32>
      %c0_9 = arith.constant 0 : index
      %c0_10 = arith.constant 0 : index
      %17 = vector.load %arg16[%c0_9, %c0_10] : memref<8x128xf32, #tpu.memory_space<vmem>>, vector<8x128xf32>
      tpu.vector_store %arg16[%c0_9, %c0_10], %16 {strides = array<i32>} : memref<8x128xf32, #tpu.memory_space<vmem>>, vector<8x128xf32>,
      %c0_11 = arith.constant 0 : index
      %c0_12 = arith.constant 0 : index
      %c0_13 = arith.constant 0 : index
      %c0_14 = arith.constant 0 : index
      %18 = vector.load %arg4[%c0_11, %c0_12, %c0_13, %c0_14] : memref<1x1x8x128xbf16, #tpu.memory_space<vmem>>, vector<1x1x8x128xbf16>
      %19 = vector.shape_cast %18 : vector<1x1x8x128xbf16> to vector<8x128xbf16>
      %20 = arith.extf %19 : vector<8x128xbf16> to vector<8x128xf32>
      %cst_15 = arith.constant 0.0883883461 : f32
      %21 = vector.broadcast %cst_15 : f32 to vector<8x128xf32>
      %22 = arith.mulf %20, %21 : vector<8x128xf32>
      %c0_16 = arith.constant 0 : index
      %c0_17 = arith.constant 0 : index
      %c0_18 = arith.constant 0 : index
      %23 = vector.load %arg7[%c0_16, %c0_17, %c0_18] : memref<1x8x128xf32, #tpu.memory_space<vmem>>, vector<1x8x128xf32>
      %24 = vector.shape_cast %23 : vector<1x8x128xf32> to vector<8x128xf32>
      %25 = arith.mulf %22, %24 : vector<8x128xf32>
      %26 = vector.extract_strided_slice %22 {offsets = [0, 64], sizes = [8, 64], strides = [1, 1]} : vector<8x128xf32> to vector<8x64xf32>
      %27 = vector.extract_strided_slice %22 {offsets = [0, 0], sizes = [8, 64], strides = [1, 1]} : vector<8x128xf32> to vector<8x64xf32>
      %28 = tpu.concatenate %26, %27 in 1 : vector<8x64xf32>, vector<8x64xf32> -> vector<8x128xf32>
      %c0_19 = arith.constant 0 : index
      %c0_20 = arith.constant 0 : index
      %c0_21 = arith.constant 0 : index
      %29 = vector.load %arg8[%c0_19, %c0_20, %c0_21] : memref<1x8x128xf32, #tpu.memory_space<vmem>>, vector<1x8x128xf32>
      %30 = vector.shape_cast %29 : vector<1x8x128xf32> to vector<8x128xf32>
      %31 = arith.mulf %28, %30 : vector<8x128xf32>
      %32 = arith.addf %25, %31 : vector<8x128xf32>
      %33 = arith.truncf %32 : vector<8x128xf32> to vector<8x128xbf16>
      %c0_22 = arith.constant 0 : index
      %c0_23 = arith.constant 0 : index
      %34 = vector.load %arg13[%c0_22, %c0_23] : memref<8x128xbf16, #tpu.memory_space<vmem>>, vector<8x128xbf16>
      tpu.vector_store %arg13[%c0_22, %c0_23], %33 {strides = array<i32>} : memref<8x128xbf16, #tpu.memory_space<vmem>>, vector<8x128xbf16>,
    } else {
    }
    %c8_i32 = arith.constant 8 : i32
    %5 = arith.muli %arg2, %c8_i32 : i32
    %6 = arith.cmpi slt, %5, %1 : i32
    %7 = arith.extui %6 : i1 to i32
    %c0_i32_1 = arith.constant 0 : i32
    %8 = arith.cmpi ne, %7, %c0_i32_1 : i32
    scf.if %8 {
      %c0 = arith.constant 0 : index
      %c0_4 = arith.constant 0 : index
      %c0_5 = arith.constant 0 : index
      %c0_6 = arith.constant 0 : index
      %12 = vector.load %arg5[%c0, %c0_4, %c0_5, %c0_6] : memref<1x1x8x128xbf16, #tpu.memory_space<vmem>>, vector<1x1x8x128xbf16>
      %13 = vector.shape_cast %12 : vector<1x1x8x128xbf16> to vector<8x128xbf16>
      %14 = arith.extf %13 : vector<8x128xbf16> to vector<8x128xf32>
      %c0_7 = arith.constant 0 : index
      %c0_8 = arith.constant 0 : index
      %c0_9 = arith.constant 0 : index
      %15 = vector.load %arg9[%c0_7, %c0_8, %c0_9] : memref<1x8x128xf32, #tpu.memory_space<vmem>>, vector<1x8x128xf32>
      %16 = vector.shape_cast %15 : vector<1x8x128xf32> to vector<8x128xf32>
      %17 = arith.mulf %14, %16 : vector<8x128xf32>
      %18 = vector.extract_strided_slice %14 {offsets = [0, 64], sizes = [8, 64], strides = [1, 1]} : vector<8x128xf32> to vector<8x64xf32>
      %19 = vector.extract_strided_slice %14 {offsets = [0, 0], sizes = [8, 64], strides = [1, 1]} : vector<8x128xf32> to vector<8x64xf32>
      %20 = tpu.concatenate %18, %19 in 1 : vector<8x64xf32>, vector<8x64xf32> -> vector<8x128xf32>
      %c0_10 = arith.constant 0 : index
      %c0_11 = arith.constant 0 : index
      %c0_12 = arith.constant 0 : index
      %21 = vector.load %arg10[%c0_10, %c0_11, %c0_12] : memref<1x8x128xf32, #tpu.memory_space<vmem>>, vector<1x8x128xf32>
      %22 = vector.shape_cast %21 : vector<1x8x128xf32> to vector<8x128xf32>
      %23 = arith.mulf %20, %22 : vector<8x128xf32>
      %24 = arith.addf %17, %23 : vector<8x128xf32>
      %c0_13 = arith.constant 0 : index
      %c0_14 = arith.constant 0 : index
      %c0_15 = arith.constant 0 : index
      %25 = vector.load %arg11[%c0_13, %c0_14, %c0_15] : memref<1x8x128xf32, #tpu.memory_space<vmem>>, vector<1x8x128xf32>
      %26 = vector.shape_cast %25 : vector<1x8x128xf32> to vector<8x128xf32>
      %27 = arith.addf %24, %26 : vector<8x128xf32>
      %c0_16 = arith.constant 0 : index
      %c0_17 = arith.constant 0 : index
      %28 = vector.load %arg13[%c0_16, %c0_17] : memref<8x128xbf16, #tpu.memory_space<vmem>>, vector<8x128xbf16>
      %29 = arith.truncf %27 : vector<8x128xf32> to vector<8x128xbf16>
      %cst = arith.constant dense<0.000000e+00> : vector<8x8xf32>
      %30 = tpu.matmul %28, %29, %cst {dimension_numbers = #tpu.dot_dimension_numbers<[1], [1], [0], [0], [0, 0, 1, 0], [], []>} : vector<8x128xbf16>, vector<8x128xbf16>, vector<8x8xf32> -> vector<8x8xf32>
      %c8_i32_18 = arith.constant 8 : i32
      %31 = arith.muli %arg2, %c8_i32_18 : i32
      %32 = tpu.iota {dimensions = array<i32: 1>} : vector<1x8xi32>
      %33 = vector.broadcast %31 : i32 to vector<1x8xi32>
      %34 = arith.addi %33, %32 : vector<1x8xi32>
      %35 = vector.broadcast %1 : i32 to vector<1x8xi32>
      %36 = arith.cmpi slt, %34, %35 : vector<1x8xi32>
      %cst_19 = arith.constant -1.000000e+30 : f32
      %37 = vector.shape_cast %36 : vector<1x8xi1> to vector<1x8xi1>
      %38 = vector.broadcast %37 : vector<1x8xi1> to vector<8x8xi1>
      %39 = vector.broadcast %cst_19 : f32 to vector<8x8xf32>
      %40 = arith.select %38, %30, %39 : vector<8x8xi1>, vector<8x8xf32>
      %c0_20 = arith.constant 0 : index
      %c0_21 = arith.constant 0 : index
      %41 = vector.load %arg14[%c0_20, %c0_21] : memref<8x1xf32, #tpu.memory_space<vmem>>, vector<8x1xf32>
      %cst_22 = arith.constant dense<0xFF800000> : vector<8xf32>
      %42 = vector.multi_reduction <maximumf>, %40, %cst_22 [1] : vector<8x8xf32> to vector<8xf32>
      %43 = vector.shape_cast %42 : vector<8xf32> to vector<8x1xf32>
      %44 = arith.maximumf %41, %43 : vector<8x1xf32>
      %45 = arith.subf %41, %44 : vector<8x1xf32>
      %46 = math.exp %45 : vector<8x1xf32>
      %47 = vector.broadcast %44 : vector<8x1xf32> to vector<8x8xf32>
      %48 = arith.subf %40, %47 : vector<8x8xf32>
      %49 = math.exp %48 : vector<8x8xf32>
      %c0_23 = arith.constant 0 : index
      %c0_24 = arith.constant 0 : index
      %50 = vector.load %arg15[%c0_23, %c0_24] : memref<8x1xf32, #tpu.memory_space<vmem>>, vector<8x1xf32>
      %51 = arith.mulf %46, %50 : vector<8x1xf32>
      %cst_25 = arith.constant dense<0.000000e+00> : vector<8xf32>
      %52 = vector.multi_reduction <add>, %49, %cst_25 [1] : vector<8x8xf32> to vector<8xf32>
      %53 = vector.shape_cast %52 : vector<8xf32> to vector<8x1xf32>
      %54 = arith.addf %51, %53 : vector<8x1xf32>
      %c0_26 = arith.constant 0 : index
      %c0_27 = arith.constant 0 : index
      %55 = vector.load %arg15[%c0_26, %c0_27] : memref<8x1xf32, #tpu.memory_space<vmem>>, vector<8x1xf32>
      tpu.vector_store %arg15[%c0_26, %c0_27], %54 {strides = array<i32>} : memref<8x1xf32, #tpu.memory_space<vmem>>, vector<8x1xf32>,
      %56 = arith.truncf %49 : vector<8x8xf32> to vector<8x8xbf16>
      %c0_28 = arith.constant 0 : index
      %c0_29 = arith.constant 0 : index
      %c0_30 = arith.constant 0 : index
      %c0_31 = arith.constant 0 : index
      %57 = vector.load %arg6[%c0_28, %c0_29, %c0_30, %c0_31] : memref<1x1x8x128xbf16, #tpu.memory_space<vmem>>, vector<1x1x8x128xbf16>
      %58 = vector.shape_cast %57 : vector<1x1x8x128xbf16> to vector<8x128xbf16>
      %cst_32 = arith.constant dense<0.000000e+00> : vector<8x128xf32>
      %59 = tpu.matmul %56, %58, %cst_32 {dimension_numbers = #tpu.dot_dimension_numbers<[1], [0], [0], [1], [0, 0, 1, 1], [], []>} : vector<8x8xbf16>, vector<8x128xbf16>, vector<8x128xf32> -> vector<8x128xf32>
      %c0_33 = arith.constant 0 : index
      %c0_34 = arith.constant 0 : index
      %60 = vector.load %arg16[%c0_33, %c0_34] : memref<8x128xf32, #tpu.memory_space<vmem>>, vector<8x128xf32>
      %61 = vector.broadcast %46 : vector<8x1xf32> to vector<8x128xf32>
      %62 = arith.mulf %61, %60 : vector<8x128xf32>
      %63 = arith.addf %62, %59 : vector<8x128xf32>
      %c0_35 = arith.constant 0 : index
      %c0_36 = arith.constant 0 : index
      %64 = vector.load %arg16[%c0_35, %c0_36] : memref<8x128xf32, #tpu.memory_space<vmem>>, vector<8x128xf32>
      tpu.vector_store %arg16[%c0_35, %c0_36], %63 {strides = array<i32>} : memref<8x128xf32, #tpu.memory_space<vmem>>, vector<8x128xf32>,
      %c0_37 = arith.constant 0 : index
      %c0_38 = arith.constant 0 : index
      %65 = vector.load %arg14[%c0_37, %c0_38] : memref<8x1xf32, #tpu.memory_space<vmem>>, vector<8x1xf32>
      tpu.vector_store %arg14[%c0_37, %c0_38], %44 {strides = array<i32>} : memref<8x1xf32, #tpu.memory_space<vmem>>, vector<8x1xf32>,
    } else {
    }
    %c0_i32_2 = arith.constant 0 : i32
    %9 = arith.cmpi eq, %arg2, %c0_i32_2 : i32
    %10 = arith.extui %9 : i1 to i32
    %c0_i32_3 = arith.constant 0 : i32
    %11 = arith.cmpi ne, %10, %c0_i32_3 : i32
    scf.if %11 {
      %c0 = arith.constant 0 : index
      %c0_4 = arith.constant 0 : index
      %12 = vector.load %arg15[%c0, %c0_4] : memref<8x1xf32, #tpu.memory_space<vmem>>, vector<8x1xf32>
      %cst = arith.constant 0.000000e+00 : f32
      %13 = vector.broadcast %cst : f32 to vector<8x1xf32>
      %14 = arith.cmpf ogt, %12, %13 : vector<8x1xf32>
      %cst_5 = arith.constant 0.000000e+00 : f32
      %15 = vector.broadcast %cst_5 : f32 to vector<8x1xf32>
      %16 = arith.cmpf ogt, %12, %15 : vector<8x1xf32>
      %cst_6 = arith.constant 1.000000e+00 : f32
      %17 = vector.broadcast %cst_6 : f32 to vector<8x1xf32>
      %18 = arith.select %16, %12, %17 : vector<8x1xi1>, vector<8x1xf32>
      %cst_7 = arith.constant 1.000000e+00 : f32
      %19 = vector.broadcast %cst_7 : f32 to vector<8x1xf32>
      %20 = arith.divf %19, %18 : vector<8x1xf32>
      %cst_8 = arith.constant 0.000000e+00 : f32
      %21 = vector.broadcast %cst_8 : f32 to vector<8x1xf32>
      %22 = arith.select %14, %20, %21 : vector<8x1xi1>, vector<8x1xf32>
      %c0_9 = arith.constant 0 : index
      %c0_10 = arith.constant 0 : index
      %23 = vector.load %arg16[%c0_9, %c0_10] : memref<8x128xf32, #tpu.memory_space<vmem>>, vector<8x128xf32>
      %24 = vector.broadcast %22 : vector<8x1xf32> to vector<8x128xf32>
      %25 = arith.mulf %23, %24 : vector<8x128xf32>
      %c0_11 = arith.constant 0 : index
      %c0_12 = arith.constant 0 : index
      %c0_13 = arith.constant 0 : index
      %c0_14 = arith.constant 0 : index
      %26 = vector.load %arg12[%c0_11, %c0_12, %c0_13, %c0_14] : memref<1x1x8x128xf32, #tpu.memory_space<vmem>>, vector<1x1x8x128xf32>
      %27 = vector.shape_cast %26 : vector<1x1x8x128xf32> to vector<8x128xf32>
      %28 = vector.shape_cast %25 : vector<8x128xf32> to vector<1x1x8x128xf32>
      tpu.vector_store %arg12[%c0_11, %c0_12, %c0_13, %c0_14], %28 {strides = array<i32>} : memref<1x1x8x128xf32, #tpu.memory_space<vmem>>, vector<1x1x8x128xf32>,
    } else {
    }
    return
  }
  func.func @transform_0(%arg0: i32, %arg1: i32, %arg2: i32, %arg3: memref<2xi32, #tpu.memory_space<smem>>) -> (i32, i32, i32, i32) {
    %c0_i32 = arith.constant 0 : i32
    %c0_i32_0 = arith.constant 0 : i32
    %c0_i32_1 = arith.constant 0 : i32
    return %arg0, %arg1, %c0_i32, %c0_i32_0 : i32, i32, i32, i32
  }
  func.func @transform_1(%arg0: i32, %arg1: i32, %arg2: i32, %arg3: memref<2xi32, #tpu.memory_space<smem>>) -> (i32, i32, i32, i32) {
    %0 = arith.index_cast %arg0 : i32 to index
    %1 = memref.load %arg3[%0] : memref<2xi32, #tpu.memory_space<smem>>
    %c7_i32 = arith.constant 7 : i32
    %2 = arith.addi %1, %c7_i32 : i32
    %c8_i32 = arith.constant 8 : i32
    %3 = arith.divsi %2, %c8_i32 : i32
    %c1_i32 = arith.constant 1 : i32
    %4 = arith.subi %3, %c1_i32 : i32
    %c0_i32 = arith.constant 0 : i32
    %5 = arith.maxsi %4, %c0_i32 : i32
    %6 = arith.minsi %arg2, %5 : i32
    %c0_i32_0 = arith.constant 0 : i32
    %c0_i32_1 = arith.constant 0 : i32
    return %arg0, %arg1, %6, %c0_i32_0 : i32, i32, i32, i32
  }
  func.func @transform_2(%arg0: i32, %arg1: i32, %arg2: i32, %arg3: memref<2xi32, #tpu.memory_space<smem>>) -> (i32, i32, i32, i32) {
    %0 = arith.index_cast %arg0 : i32 to index
    %1 = memref.load %arg3[%0] : memref<2xi32, #tpu.memory_space<smem>>
    %c7_i32 = arith.constant 7 : i32
    %2 = arith.addi %1, %c7_i32 : i32
    %c8_i32 = arith.constant 8 : i32
    %3 = arith.divsi %2, %c8_i32 : i32
    %c1_i32 = arith.constant 1 : i32
    %4 = arith.subi %3, %c1_i32 : i32
    %c0_i32 = arith.constant 0 : i32
    %5 = arith.maxsi %4, %c0_i32 : i32
    %6 = arith.minsi %arg2, %5 : i32
    %c0_i32_0 = arith.constant 0 : i32
    %c0_i32_1 = arith.constant 0 : i32
    return %arg0, %arg1, %6, %c0_i32_0 : i32, i32, i32, i32
  }
  func.func @transform_3(%arg0: i32, %arg1: i32, %arg2: i32, %arg3: memref<2xi32, #tpu.memory_space<smem>>) -> (i32, i32, i32) {
    %c0_i32 = arith.constant 0 : i32
    %c0_i32_0 = arith.constant 0 : i32
    %c0_i32_1 = arith.constant 0 : i32
    return %arg0, %c0_i32, %c0_i32_0 : i32, i32, i32
  }
  func.func @transform_4(%arg0: i32, %arg1: i32, %arg2: i32, %arg3: memref<2xi32, #tpu.memory_space<smem>>) -> (i32, i32, i32) {
    %c0_i32 = arith.constant 0 : i32
    %c0_i32_0 = arith.constant 0 : i32
    %c0_i32_1 = arith.constant 0 : i32
    return %arg0, %c0_i32, %c0_i32_0 : i32, i32, i32
  }
  func.func @transform_5(%arg0: i32, %arg1: i32, %arg2: i32, %arg3: memref<2xi32, #tpu.memory_space<smem>>) -> (i32, i32, i32) {
    %0 = arith.index_cast %arg0 : i32 to index
    %1 = memref.load %arg3[%0] : memref<2xi32, #tpu.memory_space<smem>>
    %c7_i32 = arith.constant 7 : i32
    %2 = arith.addi %1, %c7_i32 : i32
    %c8_i32 = arith.constant 8 : i32
    %3 = arith.divsi %2, %c8_i32 : i32
    %c1_i32 = arith.constant 1 : i32
    %4 = arith.subi %3, %c1_i32 : i32
    %c0_i32 = arith.constant 0 : i32
    %5 = arith.maxsi %4, %c0_i32 : i32
    %6 = arith.minsi %arg2, %5 : i32
    %c0_i32_0 = arith.constant 0 : i32
    %c0_i32_1 = arith.constant 0 : i32
    return %arg0, %6, %c0_i32_0 : i32, i32, i32
  }
  func.func @transform_6(%arg0: i32, %arg1: i32, %arg2: i32, %arg3: memref<2xi32, #tpu.memory_space<smem>>) -> (i32, i32, i32) {
    %0 = arith.index_cast %arg0 : i32 to index
    %1 = memref.load %arg3[%0] : memref<2xi32, #tpu.memory_space<smem>>
    %c7_i32 = arith.constant 7 : i32
    %2 = arith.addi %1, %c7_i32 : i32
    %c8_i32 = arith.constant 8 : i32
    %3 = arith.divsi %2, %c8_i32 : i32
    %c1_i32 = arith.constant 1 : i32
    %4 = arith.subi %3, %c1_i32 : i32
    %c0_i32 = arith.constant 0 : i32
    %5 = arith.maxsi %4, %c0_i32 : i32
    %6 = arith.minsi %arg2, %5 : i32
    %c0_i32_0 = arith.constant 0 : i32
    %c0_i32_1 = arith.constant 0 : i32
    return %arg0, %6, %c0_i32_0 : i32, i32, i32
  }
  func.func @transform_7(%arg0: i32, %arg1: i32, %arg2: i32, %arg3: memref<2xi32, #tpu.memory_space<smem>>) -> (i32, i32, i32) {
    %0 = arith.index_cast %arg0 : i32 to index
    %1 = memref.load %arg3[%0] : memref<2xi32, #tpu.memory_space<smem>>
    %c7_i32 = arith.constant 7 : i32
    %2 = arith.addi %1, %c7_i32 : i32
    %c8_i32 = arith.constant 8 : i32
    %3 = arith.divsi %2, %c8_i32 : i32
    %c1_i32 = arith.constant 1 : i32
    %4 = arith.subi %3, %c1_i32 : i32
    %c0_i32 = arith.constant 0 : i32
    %5 = arith.maxsi %4, %c0_i32 : i32
    %6 = arith.minsi %arg2, %5 : i32
    %c0_i32_0 = arith.constant 0 : i32
    %c0_i32_1 = arith.constant 0 : i32
    return %arg0, %6, %c0_i32_0 : i32, i32, i32
  }
  func.func @transform_8(%arg0: i32, %arg1: i32, %arg2: i32, %arg3: memref<2xi32, #tpu.memory_space<smem>>) -> (i32, i32, i32, i32) {
    %c0_i32 = arith.constant 0 : i32
    %c0_i32_0 = arith.constant 0 : i32
    %c0_i32_1 = arith.constant 0 : i32
    return %arg0, %arg1, %c0_i32, %c0_i32_0 : i32, i32, i32, i32
  }
}

</mosaic_0001>

<bundles_post_ra>
// kernel: tpu_custom_call.1
= control target key start
LH: loop header
LB: loop body
LE: loop exit
PB: predicated region body
PF: predicated region fallthrough
CT: control target
= control target key end

     0   :  { %s3167_s0 = inlined_call_operand.hbm [shape: s32[2], index: 0, kind: input, shape index: {}]   ;;  %s3168_s1 = inlined_call_operand.hbm [shape: bf16[2,2,8,128], index: 1, kind: input, shape index: {}]   ;;  %s3169_s2 = inlined_call_operand.hbm [shape: bf16[2,2,8,128], index: 2, kind: input, shape index: {}]   ;;  %s3170_s3 = inlined_call_operand.hbm [shape: bf16[2,2,8,128], index: 3, kind: input, shape index: {}]   ;;  %s3171_s4 = inlined_call_operand.hbm [shape: f32[2,8,128], index: 4, kind: input, shape index: {}]   ;;  %s3172_s5 = inlined_call_operand.vmem [shape: f32[2,8,128], index: 5, kind: input, shape index: {}]   ;;  %s3173_s6 = inlined_call_operand.hbm [shape: f32[2,8,128], index: 6, kind: input, shape index: {}]   ;;  %s3174_s7 = inlined_call_operand.hbm [shape: f32[2,8,128], index: 7, kind: input, shape index: {}]   ;;  %s3175_s8 = inlined_call_operand.hbm [shape: f32[2,8,128], index: 8, kind: input, shape index: {}]   ;;  %s3176_s9 = inlined_call_operand.hbm [shape: f32[2,2,8,128], index: 9, kind: output, shape index: {}]  }
   0x1   :  { %3260 = sst [smem:[#allocation74_spill]] %s3168_s1  ;;  %s1714_s11 = scalar_lea.hbm %s3167_s0, 16 }
   0x2   :  { %3261 = sst [smem:[#allocation75_spill]] %s3169_s2  ;;  %p1715_p0 = scmp.ne.s32.totalorder %s3167_s0, %s1714_s11 }
   0x3   :  { %3262 = sst [smem:[#allocation76_spill]] %s3170_s3  ;;  %p1718_p1 = scmp.lt.u32.totalorder %s1714_s11, %s3167_s0 }
   0x4   :  { %3263 = sst [smem:[#allocation77_spill]] %s3171_s4 }
   0x5   :  { %3264 = sst [smem:[#allocation78_spill]] %s3172_s5  ;;  %p1720_p2 = pnand %p1718_p1, %p1715_p0 }
   0x6   :  { %3265 = sst [smem:[#allocation79_spill]] %s3173_s6 }
   0x7   :  { %3266 = sst [smem:[#allocation80_spill]] %s3174_s7 }
   0x8   :  { %3267 = sst [smem:[#allocation81_spill]] %s3175_s8 }
   0x9   :  { %3268 = sst [smem:[#allocation82_spill]] %s3176_s9 }
   0xa   :  { %1723 = shalt.err (!%p1720_p2)  }
   0xb   :  { %s2190_s16 = smov [#allocation7]  }
   0xc   :  { %15 = dma.hbm_to_smem %s3167_s0, 16, %s2190_s16, [#allocation6] }
   0xd   :  { %2052 = dma.done.wait [#allocation6], 16 }
   0xe   :  { %2053 = vsyncadd [#allocation6], 4294967280 }
   0xf   :  { %17 = sfence }
  0x10   :  { %18 = vsyncpa [#allocation9], 0 }
  0x11   :  { %20 = vsyncpa [#allocation9 + $0x1], 0 }
  0x12   :  { %21 = vsyncpa [#allocation12], 0 }
  0x13   :  { %23 = vsyncpa [#allocation12 + $0x1], 0 }
  0x14   :  { %24 = vsyncpa [#allocation15], 0 }
  0x15   :  { %26 = vsyncpa [#allocation15 + $0x1], 0 }
  0x16   :  { %27 = vsyncpa [#allocation18], 0 }
  0x17   :  { %29 = vsyncpa [#allocation18 + $0x1], 0 }
  0x18   :  { %30 = vsyncpa [#allocation10], 0 }
  0x19   :  { %32 = vsyncpa [#allocation10 + $0x1], 0  ;;  %s2269_s19 = smov 0   ;;  %s2271_s20 = smov 0  }
  0x1a   :  { %s2273_s21 = smov 0   ;;  %s2275_s0 = smov 0  }
  0x1b   :  { %s2277_s22 = smov 0   ;;  %s2279_s23 = smov 0  }
  0x1c   :  { %s2281_s24 = smov 0   ;;  %s2283_s25 = smov 0  }
  0x1d   :  { %s2285_s26 = smov 0   ;;  %s2287_s27 = smov 0  }
  0x1e   :  { %s2289_s28 = smov 0   ;;  %s2291_s29 = smov 0  }
  0x1f   :  { %s2293_s30 = smov 0   ;;  %s2295_s10 = smov 0  }
  0x20   :  { %3269 = sst [smem:[#allocation35_spill]] %s2293_s30  ;;  %s2297_s11 = smov 0  }
  0x21   :  { %s2299_s12 = smov 0   ;;  %s2301_s13 = smov 0  }
  0x22   :  { %s2303_s14 = smov 0   ;;  %s2305_s15 = smov 0  }
  0x23   :  { %s2307_s16 = smov 0   ;;  %s2309_s17 = smov 0  }
  0x24   :  { %s2311_s18 = smov 0   ;;  %s2313_s9 = smov 0  }
  0x25   :  { %s2315_s5 = smov 0   ;;  %s2317_s8 = smov 0  }
  0x26   :  { %s2319_s6 = smov 0  }
  0x27 LB: > { %s3271_s30 = sld [smem:[#allocation35_spill]]  ;;  %3273 = sst [smem:[#allocation36_spill]] %s2092_s20  ;;  %s2188_s6 = sphi %s2319_s6, %s38_s6   ;;  %s2184_s8 = sphi %s2317_s8, %s3450_s8   ;;  %s2180_s5 = sphi %s2315_s5, %s3441_s5   ;;  %s2176_s9 = sphi %s2313_s9, %s3449_s9   ;;  %s2172_s18 = sphi %s2311_s18, %s3440_s18   ;;  %s2168_s17 = sphi %s2309_s17, %s3439_s17   ;;  %s2164_s16 = sphi %s2307_s16, %s3438_s16   ;;  %s2160_s15 = sphi %s2305_s15, %s3448_s15   ;;  %s2156_s14 = sphi %s2303_s14, %s3447_s14   ;;  %s2152_s13 = sphi %s2301_s13, %s3435_s13   ;;  %s2148_s12 = sphi %s2299_s12, %s3434_s12   ;;  %s2144_s11 = sphi %s2297_s11, %s3446_s11   ;;  %s2140_s10 = sphi %s2295_s10, %s3445_s10   ;;  %s2132_s29 = sphi %s2291_s29, %s3431_s29   ;;  %s2128_s28 = sphi %s2289_s28, %s3430_s28   ;;  %s2124_s27 = sphi %s2287_s27, %s3429_s27   ;;  %s2120_s26 = sphi %s2285_s26, %s3428_s26   ;;  %s2116_s25 = sphi %s2283_s25, %s3427_s25   ;;  %s2112_s24 = sphi %s2281_s24, %s3426_s24   ;;  %s2108_s23 = sphi %s2279_s23, %s3425_s23   ;;  %s2104_s22 = sphi %s2277_s22, %s3424_s22   ;;  %s2100_s0 = sphi %s2275_s0, %s3423_s0   ;;  %s2096_s21 = sphi %s2273_s21, %s3422_s21   ;;  %s2092_s20 = sphi %s2271_s20, %s3421_s20   ;;  %s2088_s19 = sphi %s2269_s19, %s3420_s19  }
  0x28   : > { %3272 = sst [smem:[#allocation35_spill]] %s2088_s19  ;;  %s53_s3 = sadd.s32 1, %s2180_s5 }
  0x29   : > { %3274 = sst [smem:[#allocation37_spill]] %s2096_s21  ;;  %p55_p3 = scmp.ge.s32.totalorder %s53_s3, 2 }
  0x2a   : > { %3275 = sst [smem:[#allocation38_spill]] %s2100_s0  ;;  %s57_s7 = sadd.s32 1, %s2184_s8 }
  0x2b   : > { %3276 = sst [smem:[#allocation39_spill]] %s2104_s22  ;;  %p3209_p4 = scmp.ne.s32.totalorder %s2168_s17, %s2164_s16 }
  0x2c   : > { %3277 = sst [smem:[#allocation40_spill]] %s2108_s23  ;;  %p3216_p5 = scmp.eq.s32.totalorder %s2188_s6, 0 }
  0x2d   : > { %3278 = sst [smem:[#allocation41_spill]] %s2116_s25  ;;  %s3452_s3 = smov (%p55_p3, %s53_s3), 0 }
  0x2e   : > { %3279 = sst [smem:[#allocation42_spill]] %s2120_s26  ;;  %s3454_s7 = smov (!%p55_p3, %s57_s7), %s2184_s8 }
  0x2f   : > { %3280 = sst [smem:[#allocation43_spill]] %s2128_s28  ;;  %s62_s1 = ssub.s32 %s2180_s5, %s3452_s3 }
  0x30   : > { %3281 = sst [smem:[#allocation44_spill]] %s2132_s29  ;;  %p2418_p6 = por %p3216_p5, %p3209_p4 }
  0x31   : > { %3282 = sst [smem:[#allocation45_spill]] %s2140_s10  ;;  %p59_p7 = scmp.ge.s32.totalorder %s3454_s7, 2 }
  0x32   : > { %3283 = sst [smem:[#allocation46_spill]] %s2152_s13  ;;  %p3201_p8 = scmp.ne.s32.totalorder %s2164_s16, %s2160_s15 }
  0x33   : > { %3284 = sst [smem:[#allocation47_spill]] %s2156_s14  ;;  %s3456_s7 = smov (%p59_p7, %s3454_s7), 0 }
  0x34   : > { %3285 = sst [smem:[#allocation48_spill]] %s2160_s15  ;;  %s66_s4 = sadd.s32 1, %s2168_s17 }
  0x35   : > { %3286 = sst [smem:[#allocation49_spill]] %s2164_s16  ;;  %p129_p11 = scmp.ne.s32.totalorder %s2156_s14, %s2152_s13 }
  0x36   : > { %3287 = sst [smem:[#allocation50_spill]] %s2168_s17  ;;  %p135_p13 = scmp.ne.s32.totalorder %s2152_s13, %s2148_s12 }
  0x37   : > { %3288 = sst [smem:[#allocation51_spill]] %s2172_s18  ;;  %s2400_s18 = sadd.s32 4294967295, %s2188_s6  }
  0x38   : > { %3289 = sst [smem:[#allocation52_spill]] %s2176_s9  ;;  %p3210_p9 = scmp.eq.s32.totalorder %s2400_s18, 0 }
  0x39   : > { %3290 = sst [smem:[#allocation53_spill]] %s2180_s5  ;;  %s2440_s5 = ssub.s32 %s2184_s8, %s3456_s7 }
  0x3a   : > { %3291 = sst [smem:[#allocation54_spill]] %s3452_s3  ;;  %p2434_p10 = por %p3210_p9, %p3201_p8 }
  0x3b   : > { %s3292_s9 = scalar_select %p2418_p6, 1, 0 }
  0x3c   : > { %s89_s2 = sld [smem:[#allocation7 + %s2184_s8]]  ;;  %s2444_s19 = sor.u32 %s62_s1, %s2440_s5 }
  0x3d   : > { %3293 = sst [smem:[#allocation55_spill]] %s3292_s9  ;;  %p64_p12 = scmp.eq.s32.totalorder %s2444_s19, 0 }
  0x3e   : > { %3294 = sst [smem:[#allocation56_spill]] %s3456_s7  ;;  %p2453_p0 = por %p129_p11, %p3216_p5 }
  0x3f   : > { %s3295_s3 = scalar_select %p2434_p10, 1, 0 }
  0x40   : > { %s102_s9 = sld [smem:[#allocation7 + %s3456_s7]]  ;;  %p2465_p3 = por %p135_p13, %p3210_p9 }
  0x41   : > { %3296 = sst [smem:[#allocation57_spill]] %s3295_s3  ;;  %p217_p4 = scmp.ne.s32.totalorder %s2128_s28, %s2124_s27 }
  0x42   : > { %s90_s21 = sadd.s32 7, %s89_s2  ;;  %s145_s12 = sld [smem:[#allocation7 + %s2184_s8]] }
  0x43   : > { %s3297_s15 = scalar_select %p2453_p0, 1, 0 }
  0x44   : > { %s2458_s3 = scalar_select %p64_p12, %s2168_s17, %s66_s4  }
  0x45   : > { %3298 = sst [smem:[#allocation58_spill]] %s3297_s15  ;;  %p91_p1 = scmp.lt.s32.totalorder %s90_s21, 0 }
  0x46   : > { %3299 = sst [smem:[#allocation59_spill]] %s2458_s3  ;;  %s92_s16 = ssub.s32 0, %s90_s21 }
  0x47   : > { %s1314_s20 = smin.u32 %s92_s16, %s90_s21  ;;  %s103_s1 = sadd.s32 7, %s102_s9 }
  0x48   : > { %s94_s0 = sshrl.u32 %s1314_s20, 3  ;;  %p104_p2 = scmp.lt.s32.totalorder %s103_s1, 0 }
  0x49   : > { %s95_s23 = ssub.s32 0, %s94_s0  ;;  %s105_s22 = ssub.s32 0, %s103_s1 }
  0x4a   : > { %s3458_s23 = smov (!%p91_p1, %s95_s23), %s94_s0  ;;  %s1317_s2 = smin.u32 %s105_s22, %s103_s1 }
  0x4b   : > { %s3300_s4 = scalar_select %p2465_p3, 1, 0 }
  0x4c   : > { %s1315_s9 = sadd.s32 4294967295, %s3458_s23  ;;  %s107_s20 = sshrl.u32 %s1317_s2, 3 }
  0x4d   : > { %3301 = sst [smem:[#allocation60_spill]] %s3300_s4  ;;  %p2469_p7 = scmp.gt.s32.totalorder %s1315_s9, 0 }
  0x4e   : > { %s108_s0 = ssub.s32 0, %s107_s20  ;;  %s122_s16 = sadd.s32 1, %s2156_s14 }
  0x4f   : > { %s3460_s0 = smov (!%p104_p2, %s108_s0), %s107_s20  ;;  %s3462_s9 = smov (!%p2469_p7, %s1315_s9), 0 }
  0x50   : > { %s1318_s22 = sadd.s32 4294967295, %s3460_s0  ;;  %s3464_s9 = smov (%p2469_p7, %s3462_s9), 0 }
  0x51   : > { %p111_p11 = scmp.gt.s32.totalorder %s1318_s22, 0  ;;  %s158_s23 = sld [smem:[#allocation7 + %s3456_s7]] }
  0x52   : > { %p185_p12 = scmp.ne.s32.totalorder %s2144_s11, %s2140_s10  ;;  %p191_p1 = scmp.ne.s32.totalorder %s2140_s10, %s3271_s30 }
  0x53   : > { %s3466_s22 = smov (!%p111_p11, %s1318_s22), 0  ;;  %s146_s2 = sadd.s32 7, %s145_s12 }
  0x54   : > { %p2484_p13 = por %p185_p12, %p3216_p5  ;;  %s3468_s22 = smov (%p111_p11, %s3466_s22), 0 }
  0x55   : > { %p2492_p2 = por %p191_p1, %p3210_p9  ;;  %s118_s21 = ssub.s32 %s3464_s9, %s3468_s22 }
  0x56   : > { %s3303_s1 = scalar_select %p2484_p13, 1, 0 }
  0x57   : > { %s3304_s20 = scalar_select %p2492_p2, 1, 0 }
  0x58   : > { %p147_p7 = scmp.lt.s32.totalorder %s146_s2, 0  ;;  %s119_s0 = sor.u32 %s118_s21, %s2444_s19 }
  0x59   : > { %3305 = sst [smem:[#allocation61_spill]] %s3304_s20  ;;  %s148_s3 = ssub.s32 0, %s146_s2 }
  0x5a   : > { %p120_p8 = scmp.eq.s32.totalorder %s119_s0, 0  ;;  %s1320_s4 = smin.u32 %s148_s3, %s146_s2 }
  0x5b   : > { %s150_s13 = sshrl.u32 %s1320_s4, 3  ;;  %s159_s15 = sadd.s32 7, %s158_s23 }
  0x5c   : > { %s2498_s17 = scalar_select %p120_p8, %s2156_s14, %s122_s16  }
  0x5d   : > { %s151_s30 = ssub.s32 0, %s150_s13  ;;  %p160_p11 = scmp.lt.s32.totalorder %s159_s15, 0 }
  0x5e   : > { %3306 = sst [smem:[#allocation62_spill]] %s2498_s17  ;;  %s3470_s30 = smov (!%p147_p7, %s151_s30), %s150_s13 }
  0x5f   : > { %s161_s9 = ssub.s32 0, %s159_s15  ;;  %p202_p12 = scmp.eq.s32.totalorder %s2440_s5, 0 }
  0x60   : > { %s1321_s22 = sadd.s32 4294967295, %s3470_s30  ;;  %s1323_s12 = smin.u32 %s161_s9, %s159_s15 }
  0x61   : > { %p2501_p1 = scmp.gt.s32.totalorder %s1321_s22, 0  ;;  %s163_s4 = sshrl.u32 %s1323_s12, 3 }
  0x62   : > { %s164_s16 = ssub.s32 0, %s163_s4  ;;  %s204_s23 = sadd.s32 1, %s2132_s29 }
  0x63   : > { %s3472_s22 = smov (!%p2501_p1, %s1321_s22), 0  ;;  %s3474_s16 = smov (!%p160_p11, %s164_s16), %s163_s4 }
  0x64   : > { %s3476_s22 = smov (%p2501_p1, %s3472_s22), 0  ;;  %s1324_s13 = sadd.s32 4294967295, %s3474_s16 }
  0x65   : > { %p211_p8 = scmp.ne.s32.totalorder %s2132_s29, %s2128_s28  ;;  %p167_p7 = scmp.gt.s32.totalorder %s1324_s13, 0 }
  0x66   : > { %s2517_s15 = scalar_select %p202_p12, %s2132_s29, %s204_s23  }
  0x67   : > { %s3478_s13 = smov (!%p167_p7, %s1324_s13), 0  ;;  %p2521_p9 = por %p211_p8, %p3216_p5 }
  0x68   : > { %3308 = sst [smem:[#allocation63_spill]] %s2517_s15  ;;  %p3310_p11 = scmp.eq.s32.totalorder %s2400_s18, 0 }
  0x69   : > { %s3480_s13 = smov (%p167_p7, %s3478_s13), 0  ;;  %s253_s0 = sld [smem:[#allocation7 + %s2184_s8]] }
  0x6a   : > { %p2527_p1 = por %p217_p4, %p3310_p11  ;;  %s266_s30 = sld [smem:[#allocation7 + %s3456_s7]] }
  0x6b   : > { %s174_s9 = ssub.s32 %s3476_s22, %s3480_s13  ;;  %s178_s27 = sadd.s32 1, %s2144_s11 }
  0x6c   : > { %s3311_s21 = scalar_select %p2527_p1, 1, 0 }
  0x6d   : > { %s175_s12 = sor.u32 %s174_s9, %s2444_s19  ;;  %p291_p2 = scmp.ne.s32.totalorder %s2120_s26, %s2116_s25 }
  0x6e   : > { %3312 = sst [smem:[#allocation64_spill]] %s3311_s21  ;;  %p176_p12 = scmp.eq.s32.totalorder %s175_s12, 0 }
  0x6f   : > { %p297_p3 = scmp.ne.s32.totalorder %s2116_s25, %s2112_s24  ;;  %p2541_p8 = por %p291_p2, %p3216_p5 }
  0x70   : > { %s307_s4 = sld [smem:[#allocation7 + %s2184_s8]]  ;;  %s254_s23 = sadd.s32 7, %s253_s0 }
  0x71   : > { %s3313_s3 = scalar_select %p2541_p8, 1, 0 }
  0x72   : > { %s2547_s16 = scalar_select %p176_p12, %s2144_s11, %s178_s27  }
  0x73   : > { %3314 = sst [smem:[#allocation65_spill]] %s3313_s3  ;;  %s267_s17 = sadd.s32 7, %s266_s30 }
  0x74   : > { %3315 = sst [smem:[#allocation66_spill]] %s2547_s16  ;;  %p255_p4 = scmp.lt.s32.totalorder %s254_s23, 0 }
  0x75   : > { %s256_s22 = ssub.s32 0, %s254_s23  ;;  %p268_p7 = scmp.lt.s32.totalorder %s267_s17, 0 }
  0x76   : > { %s1326_s13 = smin.u32 %s256_s22, %s254_s23  ;;  %s269_s9 = ssub.s32 0, %s267_s17 }
  0x77   : > { %s258_s19 = sshrl.u32 %s1326_s13, 3  ;;  %s1329_s15 = smin.u32 %s269_s9, %s267_s17 }
  0x78   : > { %s259_s12 = ssub.s32 0, %s258_s19  ;;  %s271_s21 = sshrl.u32 %s1329_s15, 3 }
  0x79   : > { %s3482_s12 = smov (!%p255_p4, %s259_s12), %s258_s19  ;;  %p3316_p2 = pmov %p3310_p11 }
  0x7a   : > { %s1327_s0 = sadd.s32 4294967295, %s3482_s12  ;;  %s272_s30 = ssub.s32 0, %s271_s21 }
  0x7b   : > { %p2554_p11 = por %p297_p3, %p3316_p2  ;;  %p2558_p12 = scmp.gt.s32.totalorder %s1327_s0, 0 }
  0x7c   : > { %s3320_s23 = sld [smem:[#allocation39_spill]]  ;;  %s3321_s22 = sld [smem:[#allocation40_spill]] }
  0x7d   : > { %s3317_s28 = scalar_select %p2554_p11, 1, 0 }
  0x7e   : > { %s308_s17 = sadd.s32 7, %s307_s4  ;;  %s3484_s30 = smov (!%p268_p7, %s272_s30), %s271_s21 }
  0x7f   : > { %3318 = sst [smem:[#allocation67_spill]] %s3317_s28  ;;  %s3322_s15 = sld [smem:[#allocation38_spill]] }
  0x80   : > { %s3486_s0 = smov (!%p2558_p12, %s1327_s0), 0  ;;  %s1330_s24 = sadd.s32 4294967295, %s3484_s30 }
  0x81   : > { %s284_s13 = sadd.s32 1, %s2120_s26  ;;  %s3488_s0 = smov (%p2558_p12, %s3486_s0), 0 }
  0x82   : > { %p275_p3 = scmp.gt.s32.totalorder %s1330_s24, 0  ;;  %s310_s19 = ssub.s32 0, %s308_s17 }
  0x83   : > { %s1332_s9 = smin.u32 %s310_s19, %s308_s17  ;;  %s320_s12 = sld [smem:[#allocation7 + %s3456_s7]] }
  0x84   : > { %s3490_s24 = smov (!%p275_p3, %s1330_s24), 0  ;;  %p309_p4 = scmp.lt.s32.totalorder %s308_s17, 0 }
  0x85   : > { %s312_s16 = sshrl.u32 %s1332_s9, 3  ;;  %s3492_s24 = smov (%p275_p3, %s3490_s24), 0 }
  0x86   : > { %s313_s21 = ssub.s32 0, %s312_s16  ;;  %p345_p7 = scmp.ne.s32.totalorder %s3321_s22, %s3320_s23 }
  0x87   : > { %s280_s4 = ssub.s32 %s3488_s0, %s3492_s24  ;;  %s3494_s21 = smov (!%p309_p4, %s313_s21), %s312_s16 }
  0x88   : > { %s281_s30 = sor.u32 %s280_s4, %s2440_s5  ;;  %s1333_s19 = sadd.s32 4294967295, %s3494_s21 }
  0x89   : > { %s321_s27 = sadd.s32 7, %s320_s12  ;;  %p282_p12 = scmp.eq.s32.totalorder %s281_s30, 0 }
  0x8a   : > { %p322_p5 = scmp.lt.s32.totalorder %s321_s27, 0  ;;  %s3324_s9 = sld [smem:[#allocation36_spill]] }
  0x8b   : > { %s2574_s17 = scalar_select %p282_p12, %s2120_s26, %s284_s13  }
  0x8c   : > { %s3325_s28 = sld [smem:[#allocation37_spill]]  ;;  %s323_s25 = ssub.s32 0, %s321_s27 }
  0x8d   : > { %3323 = sst [smem:[#allocation68_spill]] %s2574_s17  ;;  %s3326_s20 = sld [smem:[#allocation35_spill]] }
  0x8e   : > { %p2576_p3 = scmp.gt.s32.totalorder %s1333_s19, 0  ;;  %s1335_s24 = smin.u32 %s323_s25, %s321_s27 }
  0x8f   : > { %s325_s12 = sshrl.u32 %s1335_s24, 3  ;;  %p3328_p2 = scmp.eq.s32.totalorder %s2188_s6, 0 }
  0x90   : > { %s3496_s19 = smov (!%p2576_p3, %s1333_s19), 0  ;;  %s326_s13 = ssub.s32 0, %s325_s12 }
  0x91   : > { %p2585_p4 = por %p345_p7, %p3328_p2  ;;  %p3330_p12 = scmp.eq.s32.totalorder %s2400_s18, 0 }
  0x92   : > { %p3331_p11 = scmp.ne.s32.totalorder %s3320_s23, %s3322_s15  ;;  %s3498_s19 = smov (%p2576_p3, %s3496_s19), 0 }
  0x93   : > { %s3329_s16 = scalar_select %p2585_p4, 1, 0 }
  0x94   : > { %p2596_p1 = por %p3331_p11, %p3330_p12  ;;  %s3500_s13 = smov (!%p322_p5, %s326_s13), %s325_s12 }
  0x95   : > { %s361_s25 = sld [smem:[#allocation7 + %s2184_s8]]  ;;  %s1336_s30 = sadd.s32 4294967295, %s3500_s13 }
  0x96   : > { %s3332_s21 = scalar_select %p2596_p1, 1, 0 }
  0x97   : > { %s374_s4 = sld [smem:[#allocation7 + %s3456_s7]]  ;;  %s338_s27 = sadd.s32 1, %s3321_s22 }
  0x98   : > { %3333 = sst [smem:[#allocation35_spill]] %s3332_s21  ;;  %p329_p7 = scmp.gt.s32.totalorder %s1336_s30, 0 }
  0x99   : > { %p399_p2 = scmp.ne.s32.totalorder %s3325_s28, %s3324_s9  ;;  %p405_p10 = scmp.ne.s32.totalorder %s3324_s9, %s3326_s20 }
  0x9a   : > { %p431_p8 = scmp.eq.s32.totalorder %s2400_s18, 3  ;;  %s3502_s30 = smov (!%p329_p7, %s1336_s30), 0 }
  0x9b   : > { %p3334_p13 = scmp.eq.s32.totalorder %s2188_s6, 0  ;;  %p3337_p11 = pmov %p3330_p12 }
  0x9c   : > { %s3504_s30 = smov (%p329_p7, %s3502_s30), 0  ;;  %s3340_s0 = sld [smem:[#allocation50_spill]] }
  0x9d   : > { %p2612_p6 = por %p399_p2, %p3334_p13  ;;  %p2618_p12 = por %p405_p10, %p3337_p11 }
  0x9e   : > { %s3341_s24 = sld [smem:[#allocation49_spill]]  ;;  %s362_s12 = sadd.s32 7, %s361_s25 }
  0x9f   : > { %s3335_s23 = scalar_select %p2612_p6, 1, 0 }
  0xa0   : > { %s3338_s15 = scalar_select %p2618_p12, 1, 0 }
  0xa1   : > { %3336 = sst [smem:[#allocation38_spill]] %s3335_s23  ;;  %s375_s13 = sadd.s32 7, %s374_s4 }
  0xa2   : > { %3339 = sst [smem:[#allocation69_spill]] %s3338_s15  ;;  %s334_s20 = ssub.s32 %s3498_s19, %s3504_s30 }
  0xa3   : > { %p363_p5 = scmp.lt.s32.totalorder %s362_s12, 0  ;;  %s335_s9 = sor.u32 %s334_s20, %s2440_s5 }
  0xa4   : > { %s364_s7 = ssub.s32 0, %s362_s12  ;;  %p336_p3 = scmp.eq.s32.totalorder %s335_s9, 0 }
  0xa5   : > { %s1338_s17 = smin.u32 %s364_s7, %s362_s12  ;;  %p376_p13 = scmp.lt.s32.totalorder %s375_s13, 0 }
  0xa6   : > { %s366_s21 = sshrl.u32 %s1338_s17, 3  ;;  %s3342_s10 = sld [smem:[#allocation48_spill]] }
  0xa7   : > { %s3506_s22 = smov (!%p336_p3, %s3321_s22), %s338_s27  ;;  %s367_s15 = ssub.s32 0, %s366_s21 }
  0xa8   : > { %3343 = sst [smem:[#allocation70_spill]] %s3506_s22  ;;  %s377_s23 = ssub.s32 0, %s375_s13 }
  0xa9   : > { %s3508_s15 = smov (!%p363_p5, %s367_s15), %s366_s21  ;;  %s1341_s26 = smin.u32 %s377_s23, %s375_s13 }
  0xaa   : > { %p3344_p10 = scmp.ne.s32.totalorder %s3340_s0, %s3341_s24  ;;  %s1339_s7 = sadd.s32 4294967295, %s3508_s15 }
  0xab   : > { %s379_s25 = sshrl.u32 %s1341_s26, 3  ;;  %p370_p2 = scmp.gt.s32.totalorder %s1339_s7, 0 }
  0xac   : > { %p2631_p7 = por %p431_p8, %p3344_p10  ;;  %s380_s17 = ssub.s32 0, %s379_s25 }
  0xad   : > { %s3510_s17 = smov (!%p376_p13, %s380_s17), %s379_s25  ;;  %s3512_s7 = smov (!%p370_p2, %s1339_s7), 0 }
  0xae   : > { %s3345_s19 = scalar_select %p2631_p7, 1, 0 }
  0xaf   : > { %s1342_s4 = sadd.s32 4294967295, %s3510_s17  ;;  %s3347_s30 = sadd.s32 4294967294, %s2188_s6  }
  0xb0   : > { %3346 = sst [smem:[#allocation71_spill]] %s3345_s19  ;;  %p437_p11 = scmp.eq.s32.totalorder %s3347_s30, 3 }
  0xb1   : > { %p383_p5 = scmp.gt.s32.totalorder %s1342_s4, 0  ;;  %p3348_p3 = scmp.ne.s32.totalorder %s3341_s24, %s3342_s10 }
  0xb2   : > { %s3514_s7 = smov (%p370_p2, %s3512_s7), 0  ;;  %s392_s26 = sadd.s32 1, %s3325_s28 }
  0xb3   : > { %p2640_p12 = por %p437_p11, %p3348_p3  ;;  %s3516_s4 = smov (!%p383_p5, %s1342_s4), 0 }
  0xb4   : > { %s3518_s4 = smov (%p383_p5, %s3516_s4), 0  ;;  %p1345_p13 = scmp.ge.s32.totalorder %s2188_s6, 4 }
  0xb5   : > { %s3349_s21 = scalar_select %p2640_p12, 1, 0 }
  0xb6   : > { %s388_s27 = ssub.s32 %s3514_s7, %s3518_s4  ;;  %453 = sbr.rel (%p1345_p13) target bundleno = 441 (0x1b9), region = 16 }
  0xb7   : > { %3350 = sst [smem:[#allocation72_spill]] %s3349_s21  ;;  %s389_s23 = sor.u32 %s388_s27, %s2440_s5 }
  0xb8   : > { %p390_p8 = scmp.eq.s32.totalorder %s389_s23, 0  ;;  %s3352_s10 = sld [smem:[#allocation58_spill]] (!%p1345_p13) }
  0xb9   : > { %s479_s15 = sand.u32 (!%p1345_p13), 1, %s2156_s14   ;;  %s2652_s0 = sand.u32 (!%p1345_p13), 1, %s2188_s6  }
  0xba   : > { %s3520_s28 = smov (!%p390_p8, %s3325_s28), %s392_s26  ;;  %s1349_s24 = sshll.u32 (!%p1345_p13), %s479_s15, 2 }
  0xbb   : > { %3351 = sst [smem:[#allocation73_spill]] %s3520_s28  ;;  %s547_s5 = sand.u32 (!%p1345_p13), 1, %s2132_s29  }
  0xbc   : > { %s1361_s20 = sshll.u32 (!%p1345_p13), %s547_s5, 3  ;;  %s1362_s7 = sshll.u32 (!%p1345_p13), %s2184_s8, 7 }
  0xbd   : > { %s1458_s12 = scalar_select %p2453_p0, [#allocation7], [#allocation21] }
  0xbe   : > { %s1459_s13 = scalar_select %p2453_p0, %s2184_s8, 0 }
  0xbf   : > { %s3353_s4 = sld [smem:[#allocation77_spill]]  ;;  %s549_s27 = scalar_lea.vmem [#allocation14], %s1361_s20 }
  0xc0   : > { %s2660_s9 = sld [smem:[%s1458_s12 + %s1459_s13]]  ;;  %s556_s23 = sshll.u32 %s549_s27, 4  ;;  %s557_s23 = int_to_ptr.vmem [resolvable:$true] %s556_s23 }
  0xc1   : > { %s481_s26 = scalar_lea.vmem [#allocation11], %s1349_s24  ;;  %s3245_s14 = scalar_lea.sflag [#allocation15], %s2652_s0 }
  0xc2   : > { %s2668_s15 = sshll.u32 %s481_s26, 4  ;;  %s2695_s15 = int_to_ptr.vmem [resolvable:$true] %s2668_s15 }
  0xc5   : > { %s2666_s30 = scalar_lea.hbm %s3353_s4, %s1362_s7  ;;  %s1728_s7 = scalar_lea.hbm %s3353_s4, 256 }
  0xc6   : > { %s1724_s5 = scalar_lea.hbm %s2666_s30, 128  ;;  %p1729_p5 = scmp.lt.u32.totalorder %s2666_s30, %s3353_s4 }
  0xc7   : > { %p1725_p10 = scmp.ne.s32.totalorder %s2666_s30, %s1724_s5  ;;  %p1730_p3 = scmp.lt.u32.totalorder %s1728_s7, %s1724_s5 }
  0xc8   : > { %p1732_p13 = scmp.lt.u32.totalorder %s1724_s5, %s2666_s30 }
  0xc9   : > { %p1726_p2 = pnand %p1725_p10, %p2521_p9  ;;  %p1731_p8 = por %p1730_p3, %p1729_p5 }
  0xcb   : > { %p1727_p11 = pneg %p1726_p2  ;;  %p1733_p12 = por %p1732_p13, %p1731_p8 }
  0xcd   : > { %p1734_p7 = pnand %p1733_p12, %p1727_p11 }
  0xcf   : > { %1737 = shalt.err (!%p1734_p7)
}
  0xd0   : > { %s1738_s24 = scalar_lea.vmem %s557_s23, 128  ;;  %s2191_s20 = smov [#allocation14]  }
  0xd1   : > { %p1739_p1 = scmp.ne.s32.totalorder %s557_s23, %s1738_s24  ;;  %s1742_s27 = sshll.u32 %s2191_s20, 4  ;;  %s1743_s27 = int_to_ptr.vmem [resolvable:$false] %s1742_s27 }
  0xd2   : > { %s1744_s26 = scalar_lea.vmem %s1743_s27, 256  ;;  %p1745_p6 = scmp.lt.s32.totalorder %s557_s23, %s1743_s27 }
  0xd3   : > { %p1740_p10 = pnand %p1739_p1, %p2521_p9  ;;  %p1746_p0 = scmp.lt.s32.totalorder %s1744_s26, %s1738_s24 }
  0xd5   : > { %p1741_p2 = pneg %p1740_p10  ;;  %p1747_p4 = por %p1746_p0, %p1745_p6 }
  0xd7   : > { %p1748_p3 = pnand %p1747_p4, %p1741_p2 }
  0xd9   : > { %1751 = shalt.err (!%p1748_p3)
}
  0xda   : > { %s3354_s5 = sld [smem:[#allocation40_spill]]  ;;  %s3355_s12 = sld [smem:[#allocation50_spill]] }
  0xdb   : > { %1464 = dma.hbm_to_vmem [thread:$0]  (%p2521_p9), %s2666_s30, 128, %s557_s23, %s3245_s14  }
  0xdc   : > { %s2691_s13 = sshll.u32 %s2184_s8, 1  ;;  %s483_s7 = sadd.s32 7, %s2660_s9 }
  0xdd   : > { %p484_p6 = scmp.lt.s32.totalorder %s483_s7, 0  ;;  %s485_s2 = ssub.s32 0, %s483_s7 }
  0xde   : > { %s3356_s25 = sld [smem:[#allocation53_spill]]  ;;  %s1350_s17 = smin.u32 %s485_s2, %s483_s7 }
  0xdf   : > { %s487_s24 = sshrl.u32 %s1350_s17, 3  ;;  %p3357_p9 = scmp.ne.s32.totalorder %s3329_s16, 0 }
  0xe0   : > { %s604_s20 = sand.u32 1, %s3354_s5   ;;  %s488_s27 = ssub.s32 0, %s487_s24 }
  0xe1   : > { %s457_s26 = sand.u32 1, %s3355_s12   ;;  %s3522_s27 = smov (!%p484_p6, %s488_s27), %s487_s24 }
  0xe2   : > { %s1468_s30 = scalar_select %p3357_p9, [#allocation7], [#allocation24] }
  0xe3   : > { %s1351_s23 = sadd.s32 4294967295, %s3522_s27  ;;  %s2701_s14 = sshll.u32 %s604_s20, 3 }
  0xe4   : > { %p491_p0 = scmp.gt.s32.totalorder %s1351_s23, 0  ;;  %s1346_s9 = sshll.u32 %s457_s26, 2 }
  0xe5   : > { %s1469_s4 = scalar_select %p3357_p9, %s2184_s8, 0 }
  0xe6   : > { %s3524_s23 = smov (!%p491_p0, %s1351_s23), 0  ;;  %s466_s2 = sadd.s32 %s3356_s25, %s2691_s13 }
  0xe7   : > { %s607_s7 = sld [smem:[%s1468_s30 + %s1469_s4]]  ;;  %s3526_s23 = smov (%p491_p0, %s3524_s23), 0 }
  0xe8   : > { %s498_s5 = sadd.s32 %s3356_s25, %s3526_s23  ;;  %s461_s29 = scalar_lea.vmem [#allocation8], %s1346_s9 }
  0xe9   : > { %s500_s17 = sadd.s32 %s2691_s13, %s498_s5  ;;  %s2712_s24 = sshll.u32 %s461_s29, 4  ;;  %s2757_s24 = int_to_ptr.vmem [resolvable:$true] %s2712_s24 }
  0xea   : > { %s1354_s22 = sshll.u32 %s500_s17, 6  ;;  %s2714_s27 = sshll.u32 %s466_s2, 6 }
  0xeb   : > { %s3358_s21 = sld [smem:[#allocation75_spill]]  ;;  %s3254_s30 = scalar_lea.sflag [#allocation12], %s2652_s0 }
  0xec   : > { %p3360_p4 = scmp.ne.s32.totalorder %s3352_s10, 0 }
  0xed   : > { %s2721_s4 = sadd.s32 7, %s607_s7 }
  0xf1   : > { %s3359_s3 = smov %s3358_s21  ;;  %s2719_s19 = scalar_lea.hbm %s3358_s21, %s1354_s22 }
  0xf2   : > { %s1752_s23 = scalar_lea.hbm %s2719_s19, 64  ;;  %s1756_s2 = scalar_lea.hbm %s3359_s3, 256 }
  0xf3   : > { %p1753_p1 = scmp.ne.s32.totalorder %s2719_s19, %s1752_s23  ;;  %p1757_p11 = scmp.lt.u32.totalorder %s2719_s19, %s3359_s3 }
  0xf4   : > { %p1758_p5 = scmp.lt.u32.totalorder %s1756_s2, %s1752_s23  ;;  %p1760_p13 = scmp.lt.u32.totalorder %s1752_s23, %s2719_s19 }
  0xf5   : > { %p1754_p12 = pnand %p1753_p1, %p3360_p4 }
  0xf6   : > { %p1759_p8 = por %p1758_p5, %p1757_p11 }
  0xf7   : > { %p1755_p7 = pneg %p1754_p12 }
  0xf8   : > { %p1761_p10 = por %p1760_p13, %p1759_p8 }
  0xfa   : > { %p1762_p2 = pnand %p1761_p10, %p1755_p7 }
  0xfc   : > { %1765 = shalt.err (!%p1762_p2)
}
  0xfd   : > { %s1766_s22 = scalar_lea.vmem %s2695_s15, 64  ;;  %s2192_s21 = smov [#allocation11]  }
  0xfe   : > { %p1767_p3 = scmp.ne.s32.totalorder %s2695_s15, %s1766_s22  ;;  %s1770_s7 = sshll.u32 %s2192_s21, 4  ;;  %s1771_s7 = int_to_ptr.vmem [resolvable:$false] %s1770_s7 }
  0xff   : > { %s1772_s17 = scalar_lea.vmem %s1771_s7, 128  ;;  %p1773_p1 = scmp.lt.s32.totalorder %s2695_s15, %s1771_s7 }
 0x100   : > { %p1768_p6 = pnand %p1767_p3, %p3360_p4  ;;  %p1774_p12 = scmp.lt.s32.totalorder %s1772_s17, %s1766_s22 }
 0x102   : > { %p1769_p0 = pneg %p1768_p6  ;;  %p1775_p11 = por %p1774_p12, %p1773_p1 }
 0x104   : > { %p1776_p5 = pnand %p1775_p11, %p1769_p0 }
 0x106   : > { %1779 = shalt.err (!%p1776_p5)
}
 0x107   : > { %s3361_s20 = sld [smem:[#allocation55_spill]]  ;;  %p609_p7 = scmp.lt.s32.totalorder %s2721_s4, 0 }
 0x108   : > { %1460 = dma.hbm_to_vmem [thread:$0]  (%p3360_p4), %s2719_s19, 64, %s2695_s15, %s3254_s30  }
 0x109   : > { %s610_s23 = ssub.s32 0, %s2721_s4  ;;  %s3362_s5 = sld [smem:[#allocation74_spill]] }
 0x10a   : > { %s1369_s29 = smin.u32 %s610_s23, %s2721_s4  ;;  %s513_s21 = sand.u32 1, %s2144_s11  }
 0x10b   : > { %s612_s28 = sshrl.u32 %s1369_s29, 3  ;;  %s458_s19 = scalar_lea.sflag [#allocation9], %s457_s26 }
 0x10c   : > { %s613_s22 = ssub.s32 0, %s612_s28 }
 0x10d   : > { %s3528_s22 = smov (!%p609_p7, %s613_s22), %s612_s28  ;;  %p3364_p8 = scmp.ne.s32.totalorder %s3361_s20, 0 }
 0x10f   : > { %s3363_s7 = smov %s3362_s5  ;;  %s2754_s10 = scalar_lea.hbm %s3362_s5, %s2714_s27 }
 0x110   : > { %s1780_s15 = scalar_lea.hbm %s2754_s10, 64  ;;  %s1784_s17 = scalar_lea.hbm %s3363_s7, 256 }
 0x111   : > { %p1781_p4 = scmp.ne.s32.totalorder %s2754_s10, %s1780_s15  ;;  %p1785_p2 = scmp.lt.u32.totalorder %s2754_s10, %s3363_s7 }
 0x112   : > { %p1786_p3 = scmp.lt.u32.totalorder %s1784_s17, %s1780_s15  ;;  %p1788_p0 = scmp.lt.u32.totalorder %s1780_s15, %s2754_s10 }
 0x113   : > { %p1782_p13 = pnand %p1781_p4, %p3364_p8 }
 0x114   : > { %p1787_p6 = por %p1786_p3, %p1785_p2 }
 0x115   : > { %p1783_p10 = pneg %p1782_p13 }
 0x116   : > { %p1789_p1 = por %p1788_p0, %p1787_p6 }
 0x118   : > { %p1790_p12 = pnand %p1789_p1, %p1783_p10 }
 0x11a   : > { %1793 = shalt.err (!%p1790_p12)
}
 0x11b   : > { %s1794_s12 = scalar_lea.vmem %s2757_s24, 64  ;;  %s2193_s26 = smov [#allocation8]  }
 0x11c   : > { %p1795_p11 = scmp.ne.s32.totalorder %s2757_s24, %s1794_s12  ;;  %s1798_s29 = sshll.u32 %s2193_s26, 4  ;;  %s1799_s29 = int_to_ptr.vmem [resolvable:$false] %s1798_s29 }
 0x11d   : > { %s1800_s2 = scalar_lea.vmem %s1799_s29, 128  ;;  %p1801_p4 = scmp.lt.s32.totalorder %s2757_s24, %s1799_s29 }
 0x11e   : > { %p1796_p5 = pnand %p1795_p11, %p3364_p8  ;;  %p1802_p13 = scmp.lt.s32.totalorder %s1800_s2, %s1794_s12 }
 0x120   : > { %p1797_p7 = pneg %p1796_p5  ;;  %p1803_p2 = por %p1802_p13, %p1801_p4 }
 0x122   : > { %p1804_p3 = pnand %p1803_p2, %p1797_p7 }
 0x124   : > { %1807 = shalt.err (!%p1804_p3)
}
 0x125   : > { %1457 = dma.hbm_to_vmem [thread:$0]  (%p3364_p8), %s2754_s10, 64, %s2757_s24, %s458_s19  }
 0x126   : > { %s1370_s5 = sadd.s32 4294967295, %s3528_s22  ;;  %s606_s28 = scalar_lea.vmem [#allocation17], %s2701_s14 }
 0x127   : > { %s627_s15 = sshll.u32 %s606_s28, 4  ;;  %p616_p10 = scmp.gt.s32.totalorder %s1370_s5, 0  ;;  %s2797_s15 = int_to_ptr.vmem [resolvable:$true] %s627_s15 }
 0x128   : > { %s1355_s27 = sshll.u32 %s513_s21, 2  ;;  %p3365_p6 = scmp.ne.s32.totalorder %s3303_s1, 0 }
 0x129   : > { %s3530_s5 = smov (!%p616_p10, %s1370_s5), 0  ;;  %s3366_s14 = sld [smem:[#allocation80_spill]] }
 0x12a   : > { %s1461_s20 = scalar_select %p3365_p6, [#allocation7], [#allocation22] }
 0x12b   : > { %s1462_s4 = scalar_select %p3365_p6, %s2184_s8, 0 }
 0x12c   : > { %s3532_s5 = smov (%p616_p10, %s3530_s5), 0  ;;  %s515_s21 = scalar_lea.vmem [#allocation13], %s1355_s27 }
 0x12d   : > { %s2794_s17 = sld [smem:[%s1461_s20 + %s1462_s4]]  ;;  %s623_s23 = sadd.s32 %s2184_s8, %s3532_s5 }
 0x12e   : > { %s1372_s24 = sshll.u32 %s623_s23, 7  ;;  %s2804_s9 = sshll.u32 %s515_s21, 4  ;;  %s2835_s9 = int_to_ptr.vmem [resolvable:$true] %s2804_s9 }
 0x12f   : > { %s3367_s2 = smov %s3366_s14  ;;  %s2802_s19 = scalar_lea.hbm %s3366_s14, %s1372_s24 }
 0x130   : > { %s3253_s12 = scalar_lea.sflag [#allocation18], %s2652_s0  ;;  %s1808_s26 = scalar_lea.hbm %s2802_s19, 128 }
 0x131   : > { %p1809_p8 = scmp.ne.s32.totalorder %s2802_s19, %s1808_s26  ;;  %s1812_s28 = scalar_lea.hbm %s3367_s2, 256 }
 0x132   : > { %p1813_p12 = scmp.lt.u32.totalorder %s2802_s19, %s3367_s2  ;;  %p1814_p11 = scmp.lt.u32.totalorder %s1812_s28, %s1808_s26 }
 0x133   : > { %p1810_p0 = pnand %p1809_p8, %p3357_p9  ;;  %p1816_p7 = scmp.lt.u32.totalorder %s1808_s26, %s2802_s19 }
 0x134   : > { %p1815_p5 = por %p1814_p11, %p1813_p12 }
 0x135   : > { %p1811_p1 = pneg %p1810_p0 }
 0x136   : > { %p1817_p4 = por %p1816_p7, %p1815_p5 }
 0x138   : > { %p1818_p13 = pnand %p1817_p4, %p1811_p1 }
 0x13a   : > { %1821 = shalt.err (!%p1818_p13)
}
 0x13b   : > { %s1822_s27 = scalar_lea.vmem %s2797_s15, 128  ;;  %s2194_s23 = smov [#allocation17]  }
 0x13c   : > { %p1823_p2 = scmp.ne.s32.totalorder %s2797_s15, %s1822_s27  ;;  %s1826_s24 = sshll.u32 %s2194_s23, 4  ;;  %s1827_s24 = int_to_ptr.vmem [resolvable:$false] %s1826_s24 }
 0x13d   : > { %s1828_s10 = scalar_lea.vmem %s1827_s24, 256  ;;  %p1829_p8 = scmp.lt.s32.totalorder %s2797_s15, %s1827_s24 }
 0x13e   : > { %p1824_p3 = pnand %p1823_p2, %p3357_p9  ;;  %p1830_p0 = scmp.lt.s32.totalorder %s1828_s10, %s1822_s27 }
 0x140   : > { %p1825_p10 = pneg %p1824_p3  ;;  %p1831_p12 = por %p1830_p0, %p1829_p8 }
 0x142   : > { %p1832_p11 = pnand %p1831_p12, %p1825_p10 }
 0x144   : > { %1835 = shalt.err (!%p1832_p11)
}
 0x145   : > { %s3368_s22 = sld [smem:[#allocation65_spill]]  ;;  %s3369_s14 = sld [smem:[#allocation42_spill]] }
 0x146   : > { %1470 = dma.hbm_to_vmem [thread:$0]  (%p3357_p9), %s2802_s19, 128, %s2797_s15, %s3253_s12  }
 0x147   : > { %s3371_s21 = sld [smem:[#allocation38_spill]]  ;;  %s517_s29 = sadd.s32 7, %s2794_s17 }
 0x148   : > { %p518_p5 = scmp.lt.s32.totalorder %s517_s29, 0  ;;  %s519_s16 = ssub.s32 0, %s517_s29 }
 0x149   : > { %s1356_s28 = smin.u32 %s519_s16, %s517_s29  ;;  %s3373_s12 = sld [smem:[#allocation76_spill]] }
 0x14a   : > { %s521_s20 = sshrl.u32 %s1356_s28, 3 }
 0x14b   : > { %p3370_p1 = scmp.ne.s32.totalorder %s3368_s22, 0  ;;  %s572_s5 = sand.u32 1, %s3369_s14  }
 0x14c   : > { %s522_s4 = ssub.s32 0, %s521_s20  ;;  %s1363_s27 = sshll.u32 %s572_s5, 3 }
 0x14d   : > { %s1465_s26 = scalar_select %p3370_p1, [#allocation7], [#allocation23] }
 0x14e   : > { %s3534_s4 = smov (!%p518_p5, %s522_s4), %s521_s20  ;;  %p3372_p7 = scmp.ne.s32.totalorder %s3371_s21, 0 }
 0x14f   : > { %s1466_s15 = scalar_select %p3370_p1, %s2184_s8, 0 }
 0x150   : > { %s1357_s19 = sadd.s32 4294967295, %s3534_s4  ;;  %s574_s10 = scalar_lea.vmem [#allocation16], %s1363_s27 }
 0x151   : > { %p525_p9 = scmp.gt.s32.totalorder %s1357_s19, 0  ;;  %s575_s23 = sld [smem:[%s1465_s26 + %s1466_s15]] }
 0x152   : > { %s1471_s17 = scalar_select %p3372_p7, [#allocation7], [#allocation25] }
 0x153   : > { %s3536_s19 = smov (!%p525_p9, %s1357_s19), 0  ;;  %s2845_s14 = sshll.u32 %s574_s10, 4  ;;  %s2882_s14 = int_to_ptr.vmem [resolvable:$true] %s2845_s14 }
 0x154   : > { %s1472_s24 = scalar_select %p3372_p7, %s2184_s8, 0 }
 0x155   : > { %s3538_s19 = smov (%p525_p9, %s3536_s19), 0  ;;  %s3374_s30 = smov %s3373_s12 }
 0x156   : > { %s2847_s29 = sld [smem:[%s1471_s17 + %s1472_s24]]  ;;  %s532_s16 = sadd.s32 %s3356_s25, %s3538_s19 }
 0x157   : > { %s2850_s5 = sadd.s32 7, %s575_s23  ;;  %s534_s28 = sadd.s32 %s2691_s13, %s532_s16 }
 0x158   : > { %s1360_s26 = sshll.u32 %s534_s28, 6  ;;  %s578_s20 = ssub.s32 0, %s2850_s5 }
 0x159   : > { %s536_s2 = scalar_lea.hbm %s3373_s12, %s1360_s26  ;;  %s2859_s3 = smin.u32 %s578_s20, %s2850_s5 }
 0x15a   : > { %s1836_s27 = scalar_lea.hbm %s536_s2, 64  ;;  %s1840_s23 = scalar_lea.hbm %s3374_s30, 256 }
 0x15b   : > { %p1837_p13 = scmp.ne.s32.totalorder %s536_s2, %s1836_s27  ;;  %p1841_p10 = scmp.lt.u32.totalorder %s536_s2, %s3374_s30 }
 0x15c   : > { %p1842_p8 = scmp.lt.u32.totalorder %s1840_s23, %s1836_s27  ;;  %p1844_p12 = scmp.lt.u32.totalorder %s1836_s27, %s536_s2 }
 0x15d   : > { %p1838_p2 = pnand %p1837_p13, %p3365_p6 }
 0x15e   : > { %p1843_p0 = por %p1842_p8, %p1841_p10 }
 0x15f   : > { %p1839_p3 = pneg %p1838_p2 }
 0x160   : > { %p1845_p11 = por %p1844_p12, %p1843_p0 }
 0x162   : > { %p1846_p5 = pnand %p1845_p11, %p1839_p3 }
 0x164   : > { %1849 = shalt.err (!%p1846_p5)
}
 0x165   : > { %s1850_s12 = scalar_lea.vmem %s2835_s9, 64  ;;  %s2195_s24 = smov [#allocation13]  }
 0x166   : > { %p1851_p9 = scmp.ne.s32.totalorder %s2835_s9, %s1850_s12  ;;  %s1854_s10 = sshll.u32 %s2195_s24, 4  ;;  %s1855_s10 = int_to_ptr.vmem [resolvable:$false] %s1854_s10 }
 0x167   : > { %s1856_s16 = scalar_lea.vmem %s1855_s10, 128  ;;  %p1857_p4 = scmp.lt.s32.totalorder %s2835_s9, %s1855_s10 }
 0x168   : > { %p1852_p13 = pnand %p1851_p9, %p3365_p6  ;;  %p1858_p7 = scmp.lt.s32.totalorder %s1856_s16, %s1850_s12 }
 0x16a   : > { %p1853_p2 = pneg %p1852_p13  ;;  %p1859_p10 = por %p1858_p7, %p1857_p4 }
 0x16c   : > { %p1860_p8 = pnand %p1859_p10, %p1853_p2 }
 0x16e   : > { %1863 = shalt.err (!%p1860_p8)
}
 0x16f   : > { %s3375_s28 = scalar_lea.sflag [#allocation12], %s2652_s0  ;;  %s3376_s26 = sld [smem:[#allocation37_spill]] }
 0x170   : > { %1463 = dma.hbm_to_vmem [thread:$0]  (%p3365_p6), %s536_s2, 64, %s2835_s9, %s3375_s28  }
 0x171   : > { %s580_s20 = sshrl.u32 %s2859_s3, 3  ;;  %s640_s4 = sadd.s32 7, %s2847_s29 }
 0x172   : > { %s581_s15 = ssub.s32 0, %s580_s20  ;;  %p3377_p7 = scmp.lt.s32.totalorder %s2850_s5, 0 }
 0x173   : > { %p641_p4 = scmp.lt.s32.totalorder %s640_s4, 0  ;;  %s642_s27 = ssub.s32 0, %s640_s4 }
 0x174   : > { %s3540_s15 = smov (!%p3377_p7, %s581_s15), %s580_s20  ;;  %s1374_s25 = smin.u32 %s642_s27, %s640_s4 }
 0x175   : > { %s1365_s1 = sadd.s32 4294967295, %s3540_s15  ;;  %s644_s19 = sshrl.u32 %s1374_s25, 3 }
 0x176   : > { %p584_p3 = scmp.gt.s32.totalorder %s1365_s1, 0  ;;  %s636_s23 = sand.u32 1, %s3376_s26  }
 0x177   : > { %s645_s17 = ssub.s32 0, %s644_s19  ;;  %s2889_s3 = sshll.u32 %s636_s23, 3 }
 0x178   : > { %s3542_s1 = smov (!%p584_p3, %s1365_s1), 0  ;;  %s3544_s17 = smov (!%p641_p4, %s645_s17), %s644_s19 }
 0x179   : > { %s3546_s1 = smov (%p584_p3, %s3542_s1), 0  ;;  %s1375_s2 = sadd.s32 4294967295, %s3544_s17 }
 0x17a   : > { %s591_s9 = sadd.s32 %s2184_s8, %s3546_s1  ;;  %p2895_p6 = scmp.gt.s32.totalorder %s1375_s2, 0 }
 0x17b   : > { %s1367_s5 = sshll.u32 %s591_s9, 7  ;;  %s3379_s24 = sld [smem:[#allocation79_spill]] }
 0x181   : > { %s3380_s4 = smov %s3379_s24  ;;  %s593_s10 = scalar_lea.hbm %s3379_s24, %s1367_s5 }
 0x182   : > { %s1864_s16 = scalar_lea.hbm %s593_s10, 128  ;;  %s1868_s20 = scalar_lea.hbm %s3380_s4, 256 }
 0x183   : > { %p1865_p0 = scmp.ne.s32.totalorder %s593_s10, %s1864_s16  ;;  %p1869_p5 = scmp.lt.u32.totalorder %s593_s10, %s3380_s4 }
 0x184   : > { %p1870_p9 = scmp.lt.u32.totalorder %s1868_s20, %s1864_s16  ;;  %p1872_p2 = scmp.lt.u32.totalorder %s1864_s16, %s593_s10 }
 0x185   : > { %p1866_p12 = pnand %p1865_p0, %p3370_p1 }
 0x186   : > { %p1871_p13 = por %p1870_p9, %p1869_p5 }
 0x187   : > { %p1867_p11 = pneg %p1866_p12 }
 0x188   : > { %p1873_p10 = por %p1872_p2, %p1871_p13 }
 0x18a   : > { %p1874_p8 = pnand %p1873_p10, %p1867_p11 }
 0x18c   : > { %1877 = shalt.err (!%p1874_p8)
}
 0x18d   : > { %s1878_s1 = scalar_lea.vmem %s2882_s14, 128  ;;  %s2196_s25 = smov [#allocation16]  }
 0x18e   : > { %p1879_p7 = scmp.ne.s32.totalorder %s2882_s14, %s1878_s1  ;;  %s1882_s19 = sshll.u32 %s2196_s25, 4  ;;  %s1883_s19 = int_to_ptr.vmem [resolvable:$false] %s1882_s19 }
 0x18f   : > { %s1884_s23 = scalar_lea.vmem %s1883_s19, 256  ;;  %p1885_p0 = scmp.lt.s32.totalorder %s2882_s14, %s1883_s19 }
 0x190   : > { %p1880_p4 = pnand %p1879_p7, %p3370_p1  ;;  %p1886_p12 = scmp.lt.s32.totalorder %s1884_s23, %s1878_s1 }
 0x192   : > { %p1881_p3 = pneg %p1880_p4  ;;  %p1887_p5 = por %p1886_p12, %p1885_p0 }
 0x194   : > { %p1888_p9 = pnand %p1887_p5, %p1881_p3 }
 0x196   : > { %1891 = shalt.err (!%p1888_p9)
}
 0x197   : > { %s3381_s9 = scalar_lea.sflag [#allocation15], %s2652_s0  ;;  %s3548_s2 = smov (!%p2895_p6, %s1375_s2), 0 }
 0x198   : > { %1467 = dma.hbm_to_vmem [thread:$0]  (%p3370_p1), %s593_s10, 128, %s2882_s14, %s3381_s9  }
 0x199   : > { %s638_s5 = scalar_lea.vmem [#allocation19], %s2889_s3  ;;  %s3550_s2 = smov (%p2895_p6, %s3548_s2), 0 }
 0x19a   : > { %s659_s13 = sshll.u32 %s638_s5, 4  ;;  %s655_s12 = sadd.s32 %s2184_s8, %s3550_s2  ;;  %s2928_s13 = int_to_ptr.vmem [resolvable:$true] %s659_s13 }
 0x19b   : > { %s1377_s22 = sshll.u32 %s655_s12, 7  ;;  %s3382_s28 = sld [smem:[#allocation81_spill]] }
 0x19c   : > { %p3384_p13 = scmp.ne.s32.totalorder %s3371_s21, 0 }
 0x1a1   : > { %s3383_s1 = smov %s3382_s28  ;;  %s657_s26 = scalar_lea.hbm %s3382_s28, %s1377_s22 }
 0x1a2   : > { %s1892_s20 = scalar_lea.hbm %s657_s26, 128  ;;  %s1896_s3 = scalar_lea.hbm %s3383_s1, 256 }
 0x1a3   : > { %p1893_p11 = scmp.ne.s32.totalorder %s657_s26, %s1892_s20  ;;  %p1897_p6 = scmp.lt.u32.totalorder %s657_s26, %s3383_s1 }
 0x1a4   : > { %p1898_p10 = scmp.lt.u32.totalorder %s1896_s3, %s1892_s20  ;;  %p1900_p7 = scmp.lt.u32.totalorder %s1892_s20, %s657_s26 }
 0x1a5   : > { %p1894_p2 = pnand %p1893_p11, %p3384_p13 }
 0x1a6   : > { %p1899_p8 = por %p1898_p10, %p1897_p6 }
 0x1a7   : > { %p1895_p1 = pneg %p1894_p2 }
 0x1a8   : > { %p1901_p4 = por %p1900_p7, %p1899_p8 }
 0x1aa   : > { %p1902_p3 = pnand %p1901_p4, %p1895_p1 }
 0x1ac   : > { %1905 = shalt.err (!%p1902_p3)
}
 0x1ad   : > { %s1906_s2 = scalar_lea.vmem %s2928_s13, 128  ;;  %s2197_s15 = smov [#allocation19]  }
 0x1ae   : > { %p1907_p0 = scmp.ne.s32.totalorder %s2928_s13, %s1906_s2  ;;  %s1910_s27 = sshll.u32 %s2197_s15, 4  ;;  %s1911_s27 = int_to_ptr.vmem [resolvable:$false] %s1910_s27 }
 0x1af   : > { %s1912_s25 = scalar_lea.vmem %s1911_s27, 256  ;;  %p1913_p9 = scmp.lt.s32.totalorder %s2928_s13, %s1911_s27 }
 0x1b0   : > { %p1908_p12 = pnand %p1907_p0, %p3384_p13  ;;  %p1914_p11 = scmp.lt.s32.totalorder %s1912_s25, %s1906_s2 }
 0x1b2   : > { %p1909_p5 = pneg %p1908_p12  ;;  %p1915_p2 = por %p1914_p11, %p1913_p9 }
 0x1b4   : > { %p1916_p6 = pnand %p1915_p2, %p1909_p5 }
 0x1b6   : > { %1919 = shalt.err (!%p1916_p6)
}
 0x1b7   : > { %s3385_s19 = scalar_lea.sflag [#allocation18], %s2652_s0 }
 0x1b8   : > { %1473 = dma.hbm_to_vmem [thread:$0]  (%p3384_p13), %s657_s26, 128, %s2928_s13, %s3385_s19  }
 0x1b9 PF: > { %p1378_p1 = scmp.ge.s32.totalorder %s2188_s6, 1  ;;  %p664_p10 = scmp.lt.s32.totalorder %s2188_s6, 5 }
 0x1bb   : > { %p665_p8 = pnand %p1378_p1, %p664_p10 }
 0x1bc   : > { %s3386_s23 = sld [smem:[#allocation49_spill]] (!%p665_p8)  ;;  %s3387_s9 = sld [smem:[#allocation57_spill]] (!%p665_p8) }
 0x1bd   : > { %668 = sbr.rel (%p665_p8) target bundleno = 1537 (0x601), region = 52 }
 0x1c2   : > { %s2954_s5 = sand.u32 (!%p665_p8), 1, %s3386_s23   ;;  %p3388_p7 = scmp.ne.s32.totalorder (!%p665_p8), %s3387_s9, 0 }
 0x1c3   : > { %s1379_s12 = sshll.u32 (!%p665_p8), %s2954_s5, 2  ;;  %s671_s22 = scalar_lea.sflag (!%p665_p8), [#allocation9], %s2954_s5 }
 0x1c4   : > { %s2958_s21 = scalar_lea.vmem [#allocation8], %s1379_s12 }
 0x1c5   : > { %2055 = dma.done.wait (%p3388_p7), %s671_s22, 64  }
 0x1c6   : > { %2057 = vsyncadd (%p3388_p7), %s671_s22, 4294967232  ;;  %s3389_s0 = sld [smem:[#allocation46_spill]]  ;;  %s3390_s13 = sld [smem:[#allocation60_spill]] }
 0x1c7   : > { %s679_s24 = sand.u32 1, %s2400_s18  }
 0x1c8   : > { %s680_s26 = scalar_lea.sflag [#allocation12], %s679_s24 }
 0x1cc   : > { %s681_s16 = sand.u32 1, %s3389_s0   ;;  %p3391_p13 = scmp.ne.s32.totalorder %s3390_s13, 0 }
 0x1cd   : > { %s2966_s28 = sshll.u32 %s681_s16, 2 }
 0x1ce   : > { %s683_s20 = scalar_lea.vmem [#allocation11], %s2966_s28 }
 0x1cf   : > { %2059 = dma.done.wait (%p3391_p13), %s680_s26, 64  }
 0x1d0   : > { %2061 = vsyncadd (%p3391_p13), %s680_s26, 4294967232  ;;  %s3392_s14 = sld [smem:[#allocation45_spill]]  ;;  %s3393_s17 = sld [smem:[#allocation61_spill]] }
 0x1d6   : > { %s690_s3 = sand.u32 1, %s3392_s14   ;;  %p3394_p4 = scmp.ne.s32.totalorder %s3393_s17, 0 }
 0x1d7   : > { %s2974_s10 = sshll.u32 %s690_s3, 2 }
 0x1d8   : > { %s692_s29 = scalar_lea.vmem [#allocation13], %s2974_s10 }
 0x1d9   : > { %2063 = dma.done.wait (%p3394_p4), %s680_s26, 64  }
 0x1da   : > { %2065 = vsyncadd (%p3394_p4), %s680_s26, 4294967232  ;;  %s3395_s18 = sld [smem:[#allocation43_spill]]  ;;  %s3396_s2 = sld [smem:[#allocation64_spill]] }
 0x1db   : > { %s698_s25 = scalar_lea.sflag [#allocation15], %s679_s24 }
 0x1e0   : > { %s699_s15 = sand.u32 1, %s3395_s18   ;;  %p3397_p3 = scmp.ne.s32.totalorder %s3396_s2, 0 }
 0x1e1   : > { %s2982_s27 = sshll.u32 %s699_s15, 3 }
 0x1e2   : > { %s701_s19 = scalar_lea.vmem [#allocation14], %s2982_s27 }
 0x1e3   : > { %2067 = dma.done.wait (%p3397_p3), %s698_s25, 128  }
 0x1e4   : > { %2069 = vsyncadd (%p3397_p3), %s698_s25, 4294967168  ;;  %s3398_s23 = sld [smem:[#allocation41_spill]]  ;;  %s3399_s9 = sld [smem:[#allocation67_spill]] }
 0x1ea   : > { %s708_s12 = sand.u32 1, %s3398_s23   ;;  %p3400_p0 = scmp.ne.s32.totalorder %s3399_s9, 0 }
 0x1eb   : > { %s2990_s22 = sshll.u32 %s708_s12, 3 }
 0x1ec   : > { %s710_s0 = scalar_lea.vmem [#allocation16], %s2990_s22 }
 0x1ed   : > { %2071 = dma.done.wait (%p3400_p0), %s698_s25, 128  }
 0x1ee   : > { %2073 = vsyncadd (%p3400_p0), %s698_s25, 4294967168  ;;  %s3401_s13 = sld [smem:[#allocation39_spill]]  ;;  %s3402_s16 = sld [smem:[#allocation35_spill]] }
 0x1ef   : > { %s716_s17 = scalar_lea.sflag [#allocation18], %s679_s24 }
 0x1f4   : > { %s717_s26 = sand.u32 1, %s3401_s13   ;;  %p3403_p12 = scmp.ne.s32.totalorder %s3402_s16, 0 }
 0x1f5   : > { %s2998_s14 = sshll.u32 %s717_s26, 3 }
 0x1f6   : > { %s719_s3 = scalar_lea.vmem [#allocation17], %s2998_s14 }
 0x1f7   : > { %2075 = dma.done.wait (%p3403_p12), %s716_s17, 128  }
 0x1f8   : > { %2077 = vsyncadd (%p3403_p12), %s716_s17, 4294967168  ;;  %s3404_s18 = sld [smem:[#allocation36_spill]]  ;;  %s3405_s2 = sld [smem:[#allocation69_spill]] }
 0x1fe   : > { %s726_s15 = sand.u32 1, %s3404_s18   ;;  %p3406_p5 = scmp.ne.s32.totalorder %s3405_s2, 0 }
 0x1ff   : > { %s3006_s23 = sshll.u32 %s726_s15, 3 }
 0x200   : > { %s728_s25 = scalar_lea.vmem [#allocation19], %s3006_s23 }
 0x201   : > { %2079 = dma.done.wait (%p3406_p5), %s716_s17, 128  }
 0x202   : > { %2081 = vsyncadd (%p3406_p5), %s716_s17, 4294967168  ;;  %s3407_s24 = sld [smem:[#allocation52_spill]]  ;;  %vm870_vm0 = vcmask 7168   ;;  %s1386_s9 = sshll.u32 %s2954_s5, 3  ;;  %v2198_v0 = vmov -inf   ;;  %v2199_v1 = vmov 0.0  }
 0x203   : > { %871 = vst.msk [vmem:[#allocation3] sm:$0xff] %vm870_vm0, %v2198_v0  ;;  %872 = vst.msk [vmem:[#allocation4] sm:$0xff] %vm870_vm0, %v2199_v1  ;;  %v874_v2 = vld [vmem:[%s2958_s21] sm:$0xf]  ;;  %s2200_s13 = smov 64   ;;  %s3408_s18 = sld [smem:[#allocation78_spill]] }
 0x204   : > { %873 = vst [vmem:[#allocation5] sm:$0xff] %v2199_v1  ;;  %v875_v3 = vunpack.c.l.bf16 %v874_v2  ;;  %v877_v5 = vld [vmem:[%s701_s19] sm:$0xff]  ;;  %s3027_s21 = scalar_lea.vmem [#allocation20], %s1386_s9 }
 0x206   : > { %v876_v4 = vmul.f32 0.088388346, %v875_v3 }
 0x208   : > { %s3015_s12 = sld [smem:[#allocation7 + %s3407_s24]]  ;;  %880 = vrot.lane.b32.xlu0 %v876_v4, %s2200_s13  ;;  %p821_p9 = scmp.lt.s32.totalorder %s3407_s24, 1  ;;  %v878_v7 = vmul.f32 %v877_v5, %v876_v4 }
 0x20a   : > { %s3552_s24 = smov (!%p821_p9, %s3407_s24), 1 }
 0x20b   : > { %s1387_s16 = sshll.u32 %s3552_s24, 3 }
 0x20c   : > { %s824_s2 = scalar_lea.vmem %s3408_s18, %s1387_s16 }
 0x20d   : > { %v883_v6 = vld [vmem:[%s824_s2] sm:$0xff] }
 0x20e   : > { %p1389_p11 = scmp.le.s32.totalorder %s3015_s12, 0 }
 0x20f   : > { %v893_v12 = vld [vmem:[%s683_s20] sm:$0xf] (!%p1389_p11)  ;;  %v2201_v14 = vmov (!%p1389_p11), 0.0   ;;  %vm2202_vm1 = vmmov (!%p1389_p11), 0   ;;  %s2203_s27 = smov (!%p1389_p11), 64   ;;  %v901_v16 = vld [vmem:[%s719_s3] sm:$0xff] (!%p1389_p11)  ;;  %v948_v25 = vlaneseq (!%p1389_p11)  ;;  %v952_v27 = vstv (!%p1389_p11), %s3015_s12 }
 0x210   : > { %v894_v13 = vunpack.c.l.bf16 (!%p1389_p11), %v893_v12  ;;  %1445 = vmatprep.subr.bf16.mxu0 (!%p1389_p11), %v2201_v14  ;;  %1451 = vmatprep.subr.bf16.mxu1 (!%p1389_p11), %v2201_v14  ;;  %v895_v15 = vld [vmem:[%s710_s0] sm:$0xff] (!%p1389_p11)  ;;  %vm958_vm3 = vcmask (!%p1389_p11), 64512   ;;  %v2204_v34 = vmov (!%p1389_p11), 0   ;;  %vm987_vm4 = vcmask (!%p1389_p11), 1043456   ;;  %v1031_v53 = vld [vmem:[#allocation5] sm:$0xff] (!%p1389_p11) }
 0x211   : > { %1447 = vmatprep.mubr.msk.bf16.mxu0 (!%p1389_p11), %vm2202_vm1, %v2201_v14  ;;  %1453 = vmatprep.mubr.msk.bf16.mxu1 (!%p1389_p11), %vm2202_vm1, %v2201_v14  ;;  %v904_v20 = vld [vmem:[%s728_s25] sm:$0xff] (!%p1389_p11)  ;;  %v949_v26 = vand.u32 (!%p1389_p11), 127, %v948_v25 }
 0x212   : > { %898 = vrot.lane.b32.xlu0 (!%p1389_p11), %v894_v13, %s2203_s27  ;;  %v896_v17 = vmul.f32 (!%p1389_p11), %v895_v15, %v894_v13  ;;  %1705 = vset.pattern.permute.xlu1 (!%p1389_p11), %v2204_v34  ;;  %v957_v35 = vld [vmem:[#allocation3] sm:$0xff] (!%p1389_p11)  ;;  %v983_v40 = vld [vmem:[%s692_s29] sm:$0xf] (!%p1389_p11) }
 0x213   : > { %vm953_vm2 = vcmp.lt.s32.totalorder (!%p1389_p11), %v949_v26, %v952_v27  ;;  %1706 = vset.pattern.permute.xlu0 (!%p1389_p11), %v2204_v34  ;;  %v989_v41 = vsel (!%p1389_p11), %vm987_vm4, %v983_v40, 0  ;;  %v974_v49 = vld [vmem:[#allocation4] sm:$0xff] (!%p1389_p11) }
 0x214   : > { %1452 = vmatpush3.bf16.msra.mxu1 (!%p1389_p11), %v989_v41 }
 0x27a   : > { %v881_v8 = vpop.permute.xlu0 %880 }
 0x27b   : > { %v884_v9 = vmul.f32 %v883_v6, %v881_v8  ;;  %892 = sbr.rel (%p1389_p11) target bundleno = 1378 (0x562), region = 88 }
 0x27d   : > { %v885_v10 = vadd.f32 %v884_v9, %v878_v7 }
 0x27f   : > { %v886_v11 = vpack.c.bf16 %v885_v10, %v885_v10 }
 0x281   : > { %887 = vst [vmem:[#allocation2] sm:$0xf] %v886_v11 }
 0x284   : > { %v899_v18 = vpop.permute.xlu0 %898 }
 0x285   : > { %v902_v19 = vmul.f32 %v901_v16, %v899_v18 }
 0x287   : > { %v903_v21 = vadd.f32 %v902_v19, %v896_v17 }
 0x288   : > { %v906_v24 = vld [vmem:[#allocation2] sm:$0xf] }
 0x289   : > { %v905_v22 = vadd.f32 %v904_v20, %v903_v21 }
 0x28b   : > { %v907_v23 = vpack.c.bf16 %v905_v22, %v905_v22 }
 0x28d   : > { %1446 = vmatpush3.bf16.xpose.msra.mxu0 %v907_v23 }
 0x294   : > { %1448 = vmatmul.mubr.bf16.vlgmr.msra.gmra.mrb[0].mxu0 %v906_v24 }
 0x367   : > { %v942_v28 = vpop.f32.mrb[0].mxu0 }
 0x368   : > { %v956_v29 = vsel %vm953_vm2, %v942_v28, -1e+30  ;;  %v1449_v30 = vpop.f32.mrb[1].mxu0 }
 0x369   : > { %v945_v31 = vpop.f32.mrb[2].mxu0  ;;  %v959_v32 = vsel %vm958_vm3, %v956_v29, -inf }
 0x36a   : > { %960 = vmax.xlane.f32.xlu0 %v959_v32  ;;  %v1450_v33 = vpop.f32.mrb[3].mxu0 }
 0x3f7   : > { %v961_v36 = vpop.xlane.xlu0 %960 }
 0x3f8   : > { %v962_v37 = vmax.f32 %v957_v35, %v961_v36 }
 0x3fa   : > { %v963_v38 = vsub.f32 %v957_v35, %v962_v37  ;;  %1040 = vst.msk [vmem:[#allocation3] sm:$0xff] %vm870_vm0, %v962_v37  ;;  %968 = vperm.xlu1 %1705, %v962_v37  }
 0x3fc   : > { %v964_v39 = vmul.f32 1.442695, %v963_v38 }
 0x3fe   : > { %1707 = vpow2.f32 %v964_v39 }
 0x408   : > { %v1708_v42 = vpop.eup %1707 }
 0x409   : > { %1034 = vperm.xlu0 %1706, %v1708_v42   ;;  %v975_v50 = vmul.f32 %v1708_v42, %v974_v49 }
 0x479   : > { %v969_v43 = vpop.permute.xlu1 %968 }
 0x47a   : > { %v971_v44 = vsub.f32 %v956_v29, %v969_v43 }
 0x47c   : > { %v972_v45 = vmul.f32 1.442695, %v971_v44 }
 0x47e   : > { %1709 = vpow2.f32 %v972_v45 }
 0x488   : > { %v1710_v46 = vpop.eup %1709  ;;  %v1035_v54 = vpop.permute.xlu0 %1034 }
 0x489   : > { %v976_v47 = vsel %vm958_vm3, %v1710_v46, 0.0  ;;  %v982_v48 = vpack.c.bf16 %v1710_v46, %v1710_v46  ;;  %v1037_v55 = vmul.f32 %v1035_v54, %v1031_v53 }
 0x48a   : > { %977 = vadd.xlane.f32.xlu1 %v976_v47 }
 0x48b   : > { %1454 = vmatmul.mubr.msk.bf16.vlgmr.msra.gmra.mrb[0].mxu1 %vm958_vm3, %v982_v48 }
 0x517   : > { %v978_v51 = vpop.xlane.xlu1 %977 }
 0x518   : > { %v979_v52 = vadd.f32 %v978_v51, %v975_v50 }
 0x51a   : > { %981 = vst.msk [vmem:[#allocation4] sm:$0xff] %vm870_vm0, %v979_v52 }
 0x55e   : > { %v1025_v56 = vpop.f32.mrb[0].mxu1 }
 0x55f   : > { %v1038_v57 = vadd.f32 %v1037_v55, %v1025_v56  ;;  %v1455_v58 = vpop.f32.mrb[1].mxu1 }
 0x560   : > { %v1028_v59 = vpop.f32.mrb[2].mxu1 }
 0x561   : > { %1039 = vst [vmem:[#allocation5] sm:$0xff] %v1038_v57  ;;  %v1456_v60 = vpop.f32.mrb[3].mxu1 }
 0x562 PF: > { %v1044_v61 = vld [vmem:[#allocation4] sm:$0xff]  ;;  %s3409_s28 = sld [smem:[#allocation52_spill]]  ;;  %s3410_s20 = sld [smem:[#allocation51_spill]]  ;;  %v2205_v62 = vmov 0  }
 0x563   : > { %1711 = vset.pattern.permute.xlu0 %v2205_v62  ;;  %vm1045_vm5 = vcmp.gt.f32.partialorder %v1044_v61, 0.0  ;;  %s3411_s10 = sld [smem:[#allocation71_spill]]  ;;  %s1074_s0 = sshll.u32 %s3027_s21, 4  ;;  %s3054_s0 = int_to_ptr.vmem [resolvable:$true] %s1074_s0 }
 0x564   : > { %v1046_v63 = vsel %vm1045_vm5, %v1044_v61, 1.0  ;;  %s3412_s15 = sld [smem:[#allocation82_spill]]  ;;  %s1059_s25 = scalar_lea.sflag [#allocation10], %s2954_s5 }
 0x565   : > { %1712 = vrcp.f32 %v1046_v63  ;;  %s1920_s24 = scalar_lea.vmem %s3054_s0, 128  ;;  %s2206_s9 = smov [#allocation20]  }
 0x566   : > { %p1921_p2 = scmp.ne.s32.totalorder %s3054_s0, %s1920_s24  ;;  %s1924_s12 = sshll.u32 %s2206_s9, 4  ;;  %s1925_s12 = int_to_ptr.vmem [resolvable:$false] %s1924_s12 }
 0x567   : > { %s1926_s13 = scalar_lea.vmem %s1925_s12, 256  ;;  %p1927_p8 = scmp.lt.s32.totalorder %s3054_s0, %s1925_s12 }
 0x568   : > { %s1392_s29 = sshll.u32 %s3409_s28, 1  ;;  %v1050_v2 = vld [vmem:[#allocation5] sm:$0xff]  ;;  %p1928_p7 = scmp.lt.s32.totalorder %s1926_s13, %s1920_s24 }
 0x569   : > { %s1070_s19 = sadd.s32 %s3410_s20, %s1392_s29  ;;  %p3414_p6 = scmp.ne.s32.totalorder %s3411_s10, 0 }
 0x56a   : > { %s1393_s22 = sshll.u32 %s1070_s19, 7  ;;  %s3413_s2 = smov %s3412_s15 }
 0x56b   : > { %s3052_s23 = scalar_lea.hbm %s3412_s15, %s1393_s22  ;;  %p1922_p1 = pnand %p1921_p2, %p3414_p6 }
 0x56c   : > { %p1929_p13 = por %p1928_p7, %p1927_p8 }
 0x56d   : > { %p1923_p10 = pneg %p1922_p1 }
 0x56f   : > { %v1713_v0 = vpop.eup %1712  ;;  %p1930_p4 = pnand %p1929_p13, %p1923_p10 }
 0x570   : > { %v1049_v1 = vsel %vm1045_vm5, %v1713_v0, 0.0 }
 0x571   : > { %1053 = vperm.xlu0 %1711, %v1049_v1  }
 0x5f0   : > { %v1054_v3 = vpop.permute.xlu0 %1053 }
 0x5f1   : > { %v1056_v4 = vmul.f32 %v1054_v3, %v1050_v2 }
 0x5f3   : > { %1057 = vst [vmem:[%s3027_s21] sm:$0xff] %v1056_v4 }
 0x5f4   : > { %1933 = shalt.err (!%p1930_p4)
}
 0x5f5   : > { %s1934_s5 = scalar_lea.hbm %s3052_s23, 128  ;;  %s1938_s17 = scalar_lea.hbm %s3413_s2, 512 }
 0x5f6   : > { %p1935_p3 = scmp.ne.s32.totalorder %s3052_s23, %s1934_s5  ;;  %p1939_p5 = scmp.lt.u32.totalorder %s3052_s23, %s3413_s2 }
 0x5f7   : > { %p1940_p9 = scmp.lt.u32.totalorder %s1938_s17, %s1934_s5  ;;  %p1942_p2 = scmp.lt.u32.totalorder %s1934_s5, %s3052_s23 }
 0x5f8   : > { %p1936_p0 = pnand %p1935_p3, %p3414_p6 }
 0x5f9   : > { %p1941_p11 = por %p1940_p9, %p1939_p5 }
 0x5fa   : > { %p1937_p12 = pneg %p1936_p0 }
 0x5fb   : > { %p1943_p1 = por %p1942_p2, %p1941_p11 }
 0x5fd   : > { %p1944_p10 = pnand %p1943_p1, %p1937_p12 }
 0x5ff   : > { %1947 = shalt.err (!%p1944_p10)
}
 0x600   : > { %1481 = dma.vmem_to_hbm [thread:$0]  (%p3414_p6), %s3054_s0, 128, %s3052_s23, %s1059_s25  }
 0x601 PF: > { %s3415_s27 = sld [smem:[#allocation48_spill]]  ;;  %s3416_s28 = sld [smem:[#allocation72_spill]] }
 0x602   : > { %p1487_p8 = scmp.ge.s32.totalorder %s2188_s6, 2 }
 0x607   : > { %s1086_s20 = sand.u32 1, %s3415_s27   ;;  %p3417_p7 = scmp.ne.s32.totalorder %s3416_s28, 0 }
 0x608   : > { %s1087_s29 = scalar_lea.sflag [#allocation10], %s1086_s20 }
 0x609   : > { %p1484_p13 = pnand %p1487_p8, %p3417_p7 }
 0x60b   : > { %2083 = dma.done.wait (!%p1484_p13), %s1087_s29, 128  }
 0x60c   : > { %2085 = vsyncadd (!%p1484_p13), %s1087_s29, 4294967168  ;;  %s38_s6 = sadd.s32 1, %s2188_s6   ;;  %s3420_s19 = sld [smem:[#allocation36_spill]] }
 0x60d   : > { %p3084_p4 = scmp.ge.s32.totalorder %s38_s6, 6   ;;  %s3421_s20 = sld [smem:[#allocation37_spill]] }
 0x60e   : > { %s3422_s21 = sld [smem:[#allocation73_spill]]  ;;  %s3423_s0 = sld [smem:[#allocation39_spill]] }
 0x60f   : > { %s3424_s22 = sld [smem:[#allocation40_spill]]  ;;  %s3425_s23 = sld [smem:[#allocation70_spill]] }
 0x610   : > { %s3426_s24 = sld [smem:[#allocation41_spill]]  ;;  %s3427_s25 = sld [smem:[#allocation42_spill]] }
 0x611   : > { %s3428_s26 = sld [smem:[#allocation68_spill]]  ;;  %s3429_s27 = sld [smem:[#allocation43_spill]] }
 0x612   : > { %s3430_s28 = sld [smem:[#allocation44_spill]]  ;;  %s3431_s29 = sld [smem:[#allocation63_spill]] }
 0x613   : > { %s3432_s10 = sld [smem:[#allocation45_spill]]  ;;  %s3433_s3 = sld [smem:[#allocation66_spill]] }
 0x614   : > { %s3434_s12 = sld [smem:[#allocation46_spill]]  ;;  %s3435_s13 = sld [smem:[#allocation47_spill]] }
 0x615   : > { %s3436_s15 = sld [smem:[#allocation62_spill]]  ;;  %s3437_s9 = sld [smem:[#allocation49_spill]] }
 0x616   : > { %s3438_s16 = sld [smem:[#allocation50_spill]]  ;;  %s3439_s17 = sld [smem:[#allocation59_spill]] }
 0x617   : > { %s3440_s18 = sld [smem:[#allocation53_spill]]  ;;  %s3441_s5 = sld [smem:[#allocation54_spill]] }
 0x618   : > { %s3442_s1 = sld [smem:[#allocation56_spill]]  ;;  %37 = sbr.rel (!%p3084_p4) target bundleno = 39 (0x27), region = 184 }
 0x619   : > { %3444 = sst [smem:[#allocation35_spill]] %s3432_s10  ;;  %s3445_s10 = smov %s2144_s11 }
 0x61a   : > { %s3446_s11 = smov %s3433_s3 }
 0x61b   : > { %s3447_s14 = smov %s3436_s15  ;;  %s3448_s15 = smov %s3437_s9 }
 0x61c   : > { %s3449_s9 = smov %s2184_s8 }
 0x61e   : > { %s3450_s8 = smov %s3442_s1 }
 0x61f   :  { %1092 = vsyncpa [#allocation9], 1 }
 0x620   :  { %1094 = vsyncpa [#allocation9 + $0x1], 1 }
 0x621   :  { %1095 = vsyncpa [#allocation12], 1 }
 0x622   :  { %1097 = vsyncpa [#allocation12 + $0x1], 1 }
 0x623   :  { %1098 = vsyncpa [#allocation15], 1 }
 0x624   :  { %1100 = vsyncpa [#allocation15 + $0x1], 1 }
 0x625   :  { %1101 = vsyncpa [#allocation18], 1 }
 0x626   :  { %1103 = vsyncpa [#allocation18 + $0x1], 1 }
 0x627   :  { %1104 = vsyncpa [#allocation10], 1 }
 0x628   :  { %1106 = vsyncpa [#allocation10 + $0x1], 1 }

</bundles_post_ra>
